<compile_context>
chip_gen: v7x
topology: tpu7x:2x2x1
jax: 0.10.0
libtpu: 0.0.40
codegen_flags: <defaults>
</compile_context>

<pallas_src>
import math
import functools

import jax
import jax.numpy as jnp
from jax.experimental import pallas as pl
from jax.experimental.pallas import tpu as pltpu


# ----------------------------------------------------------------------------
# In-kernel helpers
# ----------------------------------------------------------------------------
def _layernorm(x, a, b, eps=1e-6):
    """Matches the custom PyTorch LayerNorm module:
       mean(-1), *unbiased* std (ddof=1), a*(x-mean)/(std+eps)+b.
       Exact divide (no approx reciprocal) for accuracy across layers."""
    d = x.shape[-1]
    mean = jnp.mean(x, axis=-1, keepdims=True)
    diff = x - mean
    var = jnp.sum(diff * diff, axis=-1, keepdims=True) * (1.0 / (d - 1))
    std = jnp.sqrt(var)
    return a * diff / (std + eps) + b


# ----------------------------------------------------------------------------
# Fused BERT encoder kernel: grid = (layer, batch)
# ----------------------------------------------------------------------------
def bert_encoder_kernel(x_ref, bias_ref,
                        wqkv_ref, bqkv_ref, wo_ref, bo_ref,
                        ln1a_ref, ln1b_ref,
                        w1_ref, b1_ref, w2_ref, b2_ref,
                        ln2a_ref, ln2b_ref,
                        fna_ref, fnb_ref,
                        out_ref, x_sc, *, num_heads):
    l = pl.program_id(0)
    b = pl.program_id(1)
    n_layers = pl.num_programs(0)

    # Load the embedded input into the resident activation scratch at layer 0.
    @pl.when(l == 0)
    def _():
        x_sc[b] = x_ref[0].astype(jnp.float32)

    x = x_sc[b]                          # (S, D) f32, carried across layers
    S, D = x.shape
    d_k = D // num_heads
    inv_sqrt_dk = 1.0 / math.sqrt(d_k)

    bias = bias_ref[0]                   # (1, S) additive mask bias (0 / -1e9)

    # ---- sublayer 0: x + SelfAttn(LayerNorm(x)) ----
    xn = _layernorm(x, ln1a_ref[0], ln1b_ref[0])

    # One full-width fused QKV matmul: (S, D) @ (D, 3D) -> (S, 3D), f32 acc.
    qkv = jnp.dot(xn.astype(jnp.bfloat16), wqkv_ref[0],
                  preferred_element_type=jnp.float32) + bqkv_ref[0]
    qkv_b = qkv.astype(jnp.bfloat16)     # bf16 operands for the attention MXU work

    ctx_heads = []
    for h in range(num_heads):           # static unroll; all ops are 2-D
        qh = qkv_b[:, h * d_k:(h + 1) * d_k]                  # (S, d_k)
        kh = qkv_b[:, D + h * d_k:D + (h + 1) * d_k]          # (S, d_k)
        vh = qkv_b[:, 2 * D + h * d_k:2 * D + (h + 1) * d_k]  # (S, d_k)

        # q @ k^T via dot_general contracting on the last dim of both (trans_b).
        s = jax.lax.dot_general(qh, kh, (((1,), (1,)), ((), ())),
                                preferred_element_type=jnp.float32)
        s = s * inv_sqrt_dk + bias        # (S, S) + broadcast (1, S)

        m = jnp.max(s, axis=-1, keepdims=True)
        e = jnp.exp(s - m)
        p = e * pl.reciprocal(jnp.sum(e, axis=-1, keepdims=True), approx=True)

        ctx_heads.append(jnp.dot(p.astype(jnp.bfloat16), vh,
                                 preferred_element_type=jnp.float32))

    ctx = jnp.concatenate(ctx_heads, axis=-1)                 # (S, D)
    # Fused output projection + head sum: one (S, D) @ (D, D) matmul.
    attn_out = jnp.dot(ctx.astype(jnp.bfloat16), wo_ref[0],
                       preferred_element_type=jnp.float32) + bo_ref[0]
    x1 = x + attn_out

    # ---- sublayer 1: x1 + FFN(LayerNorm(x1)) ----
    xn2 = _layernorm(x1, ln2a_ref[0], ln2b_ref[0])
    h1 = jnp.maximum(
        jnp.dot(xn2.astype(jnp.bfloat16), w1_ref[0],
                preferred_element_type=jnp.float32) + b1_ref[0], 0.0)
    ff = jnp.dot(h1.astype(jnp.bfloat16), w2_ref[0],
                 preferred_element_type=jnp.float32) + b2_ref[0]
    x_new = x1 + ff

    x_sc[b] = x_new                      # carry to next layer

    # Final encoder LayerNorm fused into the last layer step.
    @pl.when(l == n_layers - 1)
    def _():
        out_ref[0] = _layernorm(x_new, fna_ref[...], fnb_ref[...]
                                ).astype(out_ref.dtype)
    # TODO(synk): for BERT-base sizes on v7x (64 MiB VMEM), additionally tile
    # the FFN over d_ff chunks; not needed at these toy shapes.


# ----------------------------------------------------------------------------
# Wrapper: one pallas_call for the whole encoder stack
# ----------------------------------------------------------------------------
def bert_forward(src_word, src_mask, params, *, num_heads):
    emb = params["emb_table"]
    d_model = emb.shape[1]
    B, S = src_word.shape

    # word_emb: lut(x) * sqrt(d_model)   (embedding gather is JAX glue)
    x = jnp.take(emb, src_word, axis=0) * math.sqrt(d_model)

    # Additive attention-mask bias: (B, 1, S), 0 where attend, -1e9 where masked.
    mask_bias = jnp.where(src_mask == 0, -1000000000.0, 0.0
                          ).astype(jnp.float32)[:, None, :]

    n_layers = params["wqkv"].shape[0]
    d3 = params["wqkv"].shape[-1]        # 3 * d_model
    d_ff = params["w1"].shape[-1]

    def wspec(shape):
        # Per-layer stacked weight: block index depends ONLY on the layer axis,
        # so with grid (n_layers, B) each layer's weights are DMA'd once.
        z = (0,) * len(shape)
        return pl.BlockSpec((1,) + shape, lambda l, b, _z=z: (l,) + _z)

    def cspec(shape):
        # Constant (layer-independent) parameter.
        z = (0,) * len(shape)
        return pl.BlockSpec(shape, lambda l, b, _z=z: _z)

    in_specs = [
        pl.BlockSpec((1, S, d_model), lambda l, b: (b, 0, 0)),   # x (read at l=0)
        pl.BlockSpec((1, 1, S), lambda l, b: (b, 0, 0)),         # mask bias
        wspec((d_model, d3)),                                    # wqkv  (bf16)
        wspec((1, d3)),                                          # bqkv
        wspec((d_model, d_model)),                               # wo    (bf16)
        wspec((1, d_model)),                                     # bo
        wspec((1, d_model)), wspec((1, d_model)),                # ln1 a, b
        wspec((d_model, d_ff)), wspec((1, d_ff)),                # w1 (bf16), b1
        wspec((d_ff, d_model)), wspec((1, d_model)),             # w2 (bf16), b2
        wspec((1, d_model)), wspec((1, d_model)),                # ln2 a, b
        cspec((1, d_model)), cspec((1, d_model)),                # final norm a, b
    ]

    # Explicit VMEM budget: double-buffered streamed layer weights + resident
    # activation scratch + pipelined activation blocks + matmul/softmax temps.
    def _nbytes(a):
        return int(a.size) * a.dtype.itemsize

    per_layer_w = sum(_nbytes(params[k]) // n_layers
                      for k in ("wqkv", "bqkv", "wo", "bo",
                                "ln1_a", "ln1_b", "w1", "b1",
                                "w2", "b2", "ln2_a", "ln2_b"))
    act_blk = S * d_model * 4
    vmem_limit = (2 * per_layer_w
                  + B * act_blk                      # resident scratch
                  + 4 * act_blk                      # in/out blocks, 2-deep
                  + 16 * S * max(d3, d_ff, S) * 4)   # temporaries headroom
    vmem_limit = int(min(max(vmem_limit, 4 * 2 ** 20), 64 * 2 ** 20))

    return pl.pallas_call(
        functools.partial(bert_encoder_kernel, num_heads=num_heads),
        out_shape=jax.ShapeDtypeStruct((B, S, d_model), x.dtype),
        grid=(n_layers, B),
        in_specs=in_specs,
        out_specs=pl.BlockSpec((1, S, d_model), lambda l, b: (b, 0, 0)),
        scratch_shapes=[pltpu.VMEM((B, S, d_model), jnp.float32)],
        compiler_params=pltpu.CompilerParams(
            # Layer axis carries the activation; batch axis kept "arbitrary"
            # (weights stay resident across it; parallel vs arbitrary has
            # near-zero measured impact on single-TC chips).
            dimension_semantics=("arbitrary", "arbitrary"),
            vmem_limit_bytes=vmem_limit),
    )(x, mask_bias,
      params["wqkv"], params["bqkv"], params["wo"], params["bo"],
      params["ln1_a"], params["ln1_b"],
      params["w1"], params["b1"], params["w2"], params["b2"],
      params["ln2_a"], params["ln2_b"],
      params["norm_a"], params["norm_b"])


# ----------------------------------------------------------------------------
# Parameter construction (deterministic, synthetic — shapes match BERT.__init__)
# ----------------------------------------------------------------------------
def xavier_uniform(key, shape):
    fan_in, fan_out = shape[0], shape[1]
    limit = math.sqrt(6.0 / (fan_in + fan_out))
    return jax.random.uniform(key, shape, jnp.float32, -limit, limit)


def make_linear(key, d_in, d_out):
    kw, kb = jax.random.split(key)
    w = xavier_uniform(kw, (d_in, d_out))
    bound = 1.0 / math.sqrt(d_in)
    b = jax.random.uniform(kb, (1, d_out), jnp.float32, -bound, bound)
    return w, b


def make_bert_params(key, *, d_model, d_ff, num_heads, n_layers, src_vocab):
    keys = jax.random.split(key, 1 + n_layers)
    emb_table = xavier_uniform(keys[0], (src_vocab, d_model))

    wqkv_l, bqkv_l, wo_l, bo_l = [], [], [], []
    w1_l, b1_l, w2_l, b2_l = [], [], [], []
    for li in range(n_layers):
        lk = jax.random.split(keys[1 + li], 6)
        wq, bq = make_linear(lk[0], d_model, d_model)
        wk, bk = make_linear(lk[1], d_model, d_model)
        wv, bv = make_linear(lk[2], d_model, d_model)
        wo, bo = make_linear(lk[3], d_model, d_model)
        w1, b1 = make_linear(lk[4], d_model, d_ff)
        w2, b2 = make_linear(lk[5], d_ff, d_model)

        # Fused QKV weight: (D, 3D), bias (1, 3D).  Head h of Q/K/V lives in
        # columns h*d_k:(h+1)*d_k of the corresponding D-wide chunk, matching
        # the PyTorch view(.., h, d_k) split.
        wqkv_l.append(jnp.concatenate([wq, wk, wv], axis=1))
        bqkv_l.append(jnp.concatenate([bq, bk, bv], axis=1))
        wo_l.append(wo)
        bo_l.append(bo)
        w1_l.append(w1); b1_l.append(b1); w2_l.append(w2); b2_l.append(b2)

    ones = jnp.ones((n_layers, 1, d_model), jnp.float32)
    zeros = jnp.zeros((n_layers, 1, d_model), jnp.float32)
    bf16 = jnp.bfloat16
    return dict(
        emb_table=emb_table,
        wqkv=jnp.stack(wqkv_l).astype(bf16), bqkv=jnp.stack(bqkv_l),
        wo=jnp.stack(wo_l).astype(bf16), bo=jnp.stack(bo_l),
        ln1_a=ones, ln1_b=zeros,
        w1=jnp.stack(w1_l).astype(bf16), b1=jnp.stack(b1_l),
        w2=jnp.stack(w2_l).astype(bf16), b2=jnp.stack(b2_l),
        ln2_a=ones, ln2_b=zeros,
        norm_a=jnp.ones((1, d_model), jnp.float32),
        norm_b=jnp.zeros((1, d_model), jnp.float32),
    )


# ----------------------------------------------------------------------------
if __name__ == "__main__":
    # Model config (small, consistent with BERT.__init__ signature)
    head_num = 4
    d_model = 32
    dropout = 0.0      # deterministic forward
    d_ff = 64
    src_vocab = 50
    n_layers = 2
    max_senlen = 16    # position_emb unused by forward()

    batch, seq = 2, 8

    root = jax.random.PRNGKey(0)
    k_params, k_word, k_mask = jax.random.split(root, 3)

    params = make_bert_params(k_params, d_model=d_model, d_ff=d_ff,
                              num_heads=head_num, n_layers=n_layers,
                              src_vocab=src_vocab)

    src_word = jax.random.randint(k_word, (batch, seq), 0, src_vocab, jnp.int32)
    # src_mask: 1 = attend, 0 = padding (last two tokens of batch 1 masked)
    src_mask = jnp.ones((batch, seq), jnp.int32)
    src_mask = src_mask.at[1, seq - 2:].set(0)

    out = bert_forward(src_word, src_mask, params, num_heads=head_num)
    out = jax.block_until_ready(out)

    assert out.shape == (batch, seq, d_model)
    assert bool(jnp.all(jnp.isfinite(out)))
    # TODO(synk): dropout layers (nn.Dropout / F.dropout) are realized as the
    # p=0.0 deterministic case; non-zero stochastic dropout is not implemented.
    print("KERNEL_OK")
</pallas_src>

<mosaic_0001>
module attributes {stable_mosaic.version = 11 : i64} {
  func.func @bert_encoder_kernel(%arg0: i32, %arg1: i32, %arg2: memref<1x8x32xf32, #tpu.memory_space<vmem>>, %arg3: memref<1x1x8xf32, #tpu.memory_space<vmem>>, %arg4: memref<1x32x96xbf16, #tpu.memory_space<vmem>>, %arg5: memref<1x1x96xf32, #tpu.memory_space<vmem>>, %arg6: memref<1x32x32xbf16, #tpu.memory_space<vmem>>, %arg7: memref<1x1x32xf32, #tpu.memory_space<vmem>>, %arg8: memref<1x1x32xf32, #tpu.memory_space<vmem>>, %arg9: memref<1x1x32xf32, #tpu.memory_space<vmem>>, %arg10: memref<1x32x64xbf16, #tpu.memory_space<vmem>>, %arg11: memref<1x1x64xf32, #tpu.memory_space<vmem>>, %arg12: memref<1x64x32xbf16, #tpu.memory_space<vmem>>, %arg13: memref<1x1x32xf32, #tpu.memory_space<vmem>>, %arg14: memref<1x1x32xf32, #tpu.memory_space<vmem>>, %arg15: memref<1x1x32xf32, #tpu.memory_space<vmem>>, %arg16: memref<1x32xf32, #tpu.memory_space<vmem>>, %arg17: memref<1x32xf32, #tpu.memory_space<vmem>>, %arg18: memref<1x8x32xf32, #tpu.memory_space<vmem>>, %arg19: memref<2x8x32xf32, #tpu.memory_space<vmem>>) attributes {dimension_semantics = [#tpu.dimension_semantics<arbitrary>, #tpu.dimension_semantics<arbitrary>], iteration_bounds = array<i64: 2, 2>, scalar_prefetch = 0 : i64, scratch_operands = 1 : i64, tpu.core_type = #tpu.core_type<tc>, window_params = [{transform_indices = @transform_0, window_bounds = array<i64: 1, 8, 32>}, {transform_indices = @transform_1, window_bounds = array<i64: 1, 1, 8>}, {transform_indices = @transform_2, window_bounds = array<i64: 1, 32, 96>}, {transform_indices = @transform_3, window_bounds = array<i64: 1, 1, 96>}, {transform_indices = @transform_4, window_bounds = array<i64: 1, 32, 32>}, {transform_indices = @transform_5, window_bounds = array<i64: 1, 1, 32>}, {transform_indices = @transform_6, window_bounds = array<i64: 1, 1, 32>}, {transform_indices = @transform_7, window_bounds = array<i64: 1, 1, 32>}, {transform_indices = @transform_8, window_bounds = array<i64: 1, 32, 64>}, {transform_indices = @transform_9, window_bounds = array<i64: 1, 1, 64>}, {transform_indices = @transform_10, window_bounds = array<i64: 1, 64, 32>}, {transform_indices = @transform_11, window_bounds = array<i64: 1, 1, 32>}, {transform_indices = @transform_12, window_bounds = array<i64: 1, 1, 32>}, {transform_indices = @transform_13, window_bounds = array<i64: 1, 1, 32>}, {pipeline_mode = #tpu.pipeline_mode<synchronous>, transform_indices = @transform_14, window_bounds = array<i64: 1, 32>}, {pipeline_mode = #tpu.pipeline_mode<synchronous>, transform_indices = @transform_15, window_bounds = array<i64: 1, 32>}, {transform_indices = @transform_16, window_bounds = array<i64: 1, 8, 32>}]} {
    %c0_i32 = arith.constant 0 : i32
    %0 = arith.cmpi eq, %arg0, %c0_i32 : i32
    %1 = arith.extui %0 : i1 to i32
    %c0_i32_0 = arith.constant 0 : i32
    %2 = arith.cmpi ne, %1, %c0_i32_0 : i32
    scf.if %2 {
      %c0_78 = arith.constant 0 : index
      %c0_79 = arith.constant 0 : index
      %c0_80 = arith.constant 0 : index
      %181 = vector.load %arg2[%c0_78, %c0_79, %c0_80] : memref<1x8x32xf32, #tpu.memory_space<vmem>>, vector<1x8x32xf32>
      %182 = vector.shape_cast %181 : vector<1x8x32xf32> to vector<8x32xf32>
      %183 = arith.index_cast %arg1 : i32 to index
      %c0_81 = arith.constant 0 : index
      %c0_82 = arith.constant 0 : index
      %184 = vector.load %arg19[%183, %c0_81, %c0_82] : memref<2x8x32xf32, #tpu.memory_space<vmem>>, vector<1x8x32xf32>
      %185 = vector.shape_cast %184 : vector<1x8x32xf32> to vector<8x32xf32>
      %186 = vector.shape_cast %182 : vector<8x32xf32> to vector<1x8x32xf32>
      tpu.vector_store %arg19[%183, %c0_81, %c0_82], %186 {strides = array<i32>} : memref<2x8x32xf32, #tpu.memory_space<vmem>>, vector<1x8x32xf32>,
    } else {
    }
    %3 = arith.index_cast %arg1 : i32 to index
    %c0 = arith.constant 0 : index
    %c0_1 = arith.constant 0 : index
    %4 = vector.load %arg19[%3, %c0, %c0_1] : memref<2x8x32xf32, #tpu.memory_space<vmem>>, vector<1x8x32xf32>
    %5 = vector.shape_cast %4 : vector<1x8x32xf32> to vector<8x32xf32>
    %c0_2 = arith.constant 0 : index
    %c0_3 = arith.constant 0 : index
    %c0_4 = arith.constant 0 : index
    %6 = vector.load %arg3[%c0_2, %c0_3, %c0_4] : memref<1x1x8xf32, #tpu.memory_space<vmem>>, vector<1x1x8xf32>
    %7 = vector.shape_cast %6 : vector<1x1x8xf32> to vector<1x8xf32>
    %c0_5 = arith.constant 0 : index
    %c0_6 = arith.constant 0 : index
    %c0_7 = arith.constant 0 : index
    %8 = vector.load %arg8[%c0_5, %c0_6, %c0_7] : memref<1x1x32xf32, #tpu.memory_space<vmem>>, vector<1x1x32xf32>
    %9 = vector.shape_cast %8 : vector<1x1x32xf32> to vector<1x32xf32>
    %c0_8 = arith.constant 0 : index
    %c0_9 = arith.constant 0 : index
    %c0_10 = arith.constant 0 : index
    %10 = vector.load %arg9[%c0_8, %c0_9, %c0_10] : memref<1x1x32xf32, #tpu.memory_space<vmem>>, vector<1x1x32xf32>
    %11 = vector.shape_cast %10 : vector<1x1x32xf32> to vector<1x32xf32>
    %cst = arith.constant dense<0.000000e+00> : vector<8xf32>
    %12 = vector.multi_reduction <add>, %5, %cst [1] : vector<8x32xf32> to vector<8xf32>
    %13 = vector.shape_cast %12 : vector<8xf32> to vector<8x1xf32>
    %cst_11 = arith.constant 3.200000e+01 : f32
    %14 = vector.broadcast %cst_11 : f32 to vector<8x1xf32>
    %15 = arith.divf %13, %14 : vector<8x1xf32>
    %16 = vector.broadcast %15 : vector<8x1xf32> to vector<8x32xf32>
    %17 = arith.subf %5, %16 : vector<8x32xf32>
    %18 = arith.mulf %17, %17 : vector<8x32xf32>
    %cst_12 = arith.constant dense<0.000000e+00> : vector<8xf32>
    %19 = vector.multi_reduction <add>, %18, %cst_12 [1] : vector<8x32xf32> to vector<8xf32>
    %20 = vector.shape_cast %19 : vector<8xf32> to vector<8x1xf32>
    %cst_13 = arith.constant 0.0322580636 : f32
    %21 = vector.broadcast %cst_13 : f32 to vector<8x1xf32>
    %22 = arith.mulf %20, %21 : vector<8x1xf32>
    %23 = math.sqrt %22 : vector<8x1xf32>
    %24 = vector.broadcast %9 : vector<1x32xf32> to vector<8x32xf32>
    %25 = arith.mulf %24, %17 : vector<8x32xf32>
    %cst_14 = arith.constant 9.99999997E-7 : f32
    %26 = vector.broadcast %cst_14 : f32 to vector<8x1xf32>
    %27 = arith.addf %23, %26 : vector<8x1xf32>
    %28 = vector.broadcast %27 : vector<8x1xf32> to vector<8x32xf32>
    %29 = arith.divf %25, %28 : vector<8x32xf32>
    %30 = vector.broadcast %11 : vector<1x32xf32> to vector<8x32xf32>
    %31 = arith.addf %29, %30 : vector<8x32xf32>
    %32 = arith.truncf %31 : vector<8x32xf32> to vector<8x32xbf16>
    %c0_15 = arith.constant 0 : index
    %c0_16 = arith.constant 0 : index
    %c0_17 = arith.constant 0 : index
    %33 = vector.load %arg4[%c0_15, %c0_16, %c0_17] : memref<1x32x96xbf16, #tpu.memory_space<vmem>>, vector<1x32x96xbf16>
    %34 = vector.shape_cast %33 : vector<1x32x96xbf16> to vector<32x96xbf16>
    %cst_18 = arith.constant dense<0.000000e+00> : vector<8x96xf32>
    %35 = tpu.matmul %32, %34, %cst_18 {dimension_numbers = #tpu.dot_dimension_numbers<[1], [0], [0], [1], [0, 0, 1, 1], [], []>} : vector<8x32xbf16>, vector<32x96xbf16>, vector<8x96xf32> -> vector<8x96xf32>
    %c0_19 = arith.constant 0 : index
    %c0_20 = arith.constant 0 : index
    %c0_21 = arith.constant 0 : index
    %36 = vector.load %arg5[%c0_19, %c0_20, %c0_21] : memref<1x1x96xf32, #tpu.memory_space<vmem>>, vector<1x1x96xf32>
    %37 = vector.shape_cast %36 : vector<1x1x96xf32> to vector<1x96xf32>
    %38 = vector.broadcast %37 : vector<1x96xf32> to vector<8x96xf32>
    %39 = arith.addf %35, %38 : vector<8x96xf32>
    %40 = arith.truncf %39 : vector<8x96xf32> to vector<8x96xbf16>
    %41 = vector.extract_strided_slice %40 {offsets = [0, 0], sizes = [8, 8], strides = [1, 1]} : vector<8x96xbf16> to vector<8x8xbf16>
    %42 = vector.extract_strided_slice %40 {offsets = [0, 32], sizes = [8, 8], strides = [1, 1]} : vector<8x96xbf16> to vector<8x8xbf16>
    %43 = vector.extract_strided_slice %40 {offsets = [0, 64], sizes = [8, 8], strides = [1, 1]} : vector<8x96xbf16> to vector<8x8xbf16>
    %cst_22 = arith.constant dense<0.000000e+00> : vector<8x8xf32>
    %44 = tpu.matmul %41, %42, %cst_22 {dimension_numbers = #tpu.dot_dimension_numbers<[1], [1], [0], [0], [0, 0, 1, 0], [], []>} : vector<8x8xbf16>, vector<8x8xbf16>, vector<8x8xf32> -> vector<8x8xf32>
    %cst_23 = arith.constant 0.353553385 : f32
    %45 = vector.broadcast %cst_23 : f32 to vector<8x8xf32>
    %46 = arith.mulf %44, %45 : vector<8x8xf32>
    %47 = vector.broadcast %7 : vector<1x8xf32> to vector<8x8xf32>
    %48 = arith.addf %46, %47 : vector<8x8xf32>
    %cst_24 = arith.constant dense<0xFF800000> : vector<8xf32>
    %49 = vector.multi_reduction <maximumf>, %48, %cst_24 [1] : vector<8x8xf32> to vector<8xf32>
    %50 = vector.shape_cast %49 : vector<8xf32> to vector<8x1xf32>
    %51 = vector.broadcast %50 : vector<8x1xf32> to vector<8x8xf32>
    %52 = arith.subf %48, %51 : vector<8x8xf32>
    %53 = math.exp %52 : vector<8x8xf32>
    %cst_25 = arith.constant dense<0.000000e+00> : vector<8xf32>
    %54 = vector.multi_reduction <add>, %53, %cst_25 [1] : vector<8x8xf32> to vector<8xf32>
    %55 = vector.shape_cast %54 : vector<8xf32> to vector<8x1xf32>
    %56 = tpu.reciprocal %55 {approx = true} : vector<8x1xf32> -> vector<8x1xf32>
    %57 = vector.broadcast %56 : vector<8x1xf32> to vector<8x8xf32>
    %58 = arith.mulf %53, %57 : vector<8x8xf32>
    %59 = arith.truncf %58 : vector<8x8xf32> to vector<8x8xbf16>
    %cst_26 = arith.constant dense<0.000000e+00> : vector<8x8xf32>
    %60 = tpu.matmul %59, %43, %cst_26 {dimension_numbers = #tpu.dot_dimension_numbers<[1], [0], [0], [1], [0, 0, 1, 1], [], []>} : vector<8x8xbf16>, vector<8x8xbf16>, vector<8x8xf32> -> vector<8x8xf32>
    %61 = vector.extract_strided_slice %40 {offsets = [0, 8], sizes = [8, 8], strides = [1, 1]} : vector<8x96xbf16> to vector<8x8xbf16>
    %62 = vector.extract_strided_slice %40 {offsets = [0, 40], sizes = [8, 8], strides = [1, 1]} : vector<8x96xbf16> to vector<8x8xbf16>
    %63 = vector.extract_strided_slice %40 {offsets = [0, 72], sizes = [8, 8], strides = [1, 1]} : vector<8x96xbf16> to vector<8x8xbf16>
    %cst_27 = arith.constant dense<0.000000e+00> : vector<8x8xf32>
    %64 = tpu.matmul %61, %62, %cst_27 {dimension_numbers = #tpu.dot_dimension_numbers<[1], [1], [0], [0], [0, 0, 1, 0], [], []>} : vector<8x8xbf16>, vector<8x8xbf16>, vector<8x8xf32> -> vector<8x8xf32>
    %cst_28 = arith.constant 0.353553385 : f32
    %65 = vector.broadcast %cst_28 : f32 to vector<8x8xf32>
    %66 = arith.mulf %64, %65 : vector<8x8xf32>
    %67 = vector.broadcast %7 : vector<1x8xf32> to vector<8x8xf32>
    %68 = arith.addf %66, %67 : vector<8x8xf32>
    %cst_29 = arith.constant dense<0xFF800000> : vector<8xf32>
    %69 = vector.multi_reduction <maximumf>, %68, %cst_29 [1] : vector<8x8xf32> to vector<8xf32>
    %70 = vector.shape_cast %69 : vector<8xf32> to vector<8x1xf32>
    %71 = vector.broadcast %70 : vector<8x1xf32> to vector<8x8xf32>
    %72 = arith.subf %68, %71 : vector<8x8xf32>
    %73 = math.exp %72 : vector<8x8xf32>
    %cst_30 = arith.constant dense<0.000000e+00> : vector<8xf32>
    %74 = vector.multi_reduction <add>, %73, %cst_30 [1] : vector<8x8xf32> to vector<8xf32>
    %75 = vector.shape_cast %74 : vector<8xf32> to vector<8x1xf32>
    %76 = tpu.reciprocal %75 {approx = true} : vector<8x1xf32> -> vector<8x1xf32>
    %77 = vector.broadcast %76 : vector<8x1xf32> to vector<8x8xf32>
    %78 = arith.mulf %73, %77 : vector<8x8xf32>
    %79 = arith.truncf %78 : vector<8x8xf32> to vector<8x8xbf16>
    %cst_31 = arith.constant dense<0.000000e+00> : vector<8x8xf32>
    %80 = tpu.matmul %79, %63, %cst_31 {dimension_numbers = #tpu.dot_dimension_numbers<[1], [0], [0], [1], [0, 0, 1, 1], [], []>} : vector<8x8xbf16>, vector<8x8xbf16>, vector<8x8xf32> -> vector<8x8xf32>
    %81 = vector.extract_strided_slice %40 {offsets = [0, 16], sizes = [8, 8], strides = [1, 1]} : vector<8x96xbf16> to vector<8x8xbf16>
    %82 = vector.extract_strided_slice %40 {offsets = [0, 48], sizes = [8, 8], strides = [1, 1]} : vector<8x96xbf16> to vector<8x8xbf16>
    %83 = vector.extract_strided_slice %40 {offsets = [0, 80], sizes = [8, 8], strides = [1, 1]} : vector<8x96xbf16> to vector<8x8xbf16>
    %cst_32 = arith.constant dense<0.000000e+00> : vector<8x8xf32>
    %84 = tpu.matmul %81, %82, %cst_32 {dimension_numbers = #tpu.dot_dimension_numbers<[1], [1], [0], [0], [0, 0, 1, 0], [], []>} : vector<8x8xbf16>, vector<8x8xbf16>, vector<8x8xf32> -> vector<8x8xf32>
    %cst_33 = arith.constant 0.353553385 : f32
    %85 = vector.broadcast %cst_33 : f32 to vector<8x8xf32>
    %86 = arith.mulf %84, %85 : vector<8x8xf32>
    %87 = vector.broadcast %7 : vector<1x8xf32> to vector<8x8xf32>
    %88 = arith.addf %86, %87 : vector<8x8xf32>
    %cst_34 = arith.constant dense<0xFF800000> : vector<8xf32>
    %89 = vector.multi_reduction <maximumf>, %88, %cst_34 [1] : vector<8x8xf32> to vector<8xf32>
    %90 = vector.shape_cast %89 : vector<8xf32> to vector<8x1xf32>
    %91 = vector.broadcast %90 : vector<8x1xf32> to vector<8x8xf32>
    %92 = arith.subf %88, %91 : vector<8x8xf32>
    %93 = math.exp %92 : vector<8x8xf32>
    %cst_35 = arith.constant dense<0.000000e+00> : vector<8xf32>
    %94 = vector.multi_reduction <add>, %93, %cst_35 [1] : vector<8x8xf32> to vector<8xf32>
    %95 = vector.shape_cast %94 : vector<8xf32> to vector<8x1xf32>
    %96 = tpu.reciprocal %95 {approx = true} : vector<8x1xf32> -> vector<8x1xf32>
    %97 = vector.broadcast %96 : vector<8x1xf32> to vector<8x8xf32>
    %98 = arith.mulf %93, %97 : vector<8x8xf32>
    %99 = arith.truncf %98 : vector<8x8xf32> to vector<8x8xbf16>
    %cst_36 = arith.constant dense<0.000000e+00> : vector<8x8xf32>
    %100 = tpu.matmul %99, %83, %cst_36 {dimension_numbers = #tpu.dot_dimension_numbers<[1], [0], [0], [1], [0, 0, 1, 1], [], []>} : vector<8x8xbf16>, vector<8x8xbf16>, vector<8x8xf32> -> vector<8x8xf32>
    %101 = vector.extract_strided_slice %40 {offsets = [0, 24], sizes = [8, 8], strides = [1, 1]} : vector<8x96xbf16> to vector<8x8xbf16>
    %102 = vector.extract_strided_slice %40 {offsets = [0, 56], sizes = [8, 8], strides = [1, 1]} : vector<8x96xbf16> to vector<8x8xbf16>
    %103 = vector.extract_strided_slice %40 {offsets = [0, 88], sizes = [8, 8], strides = [1, 1]} : vector<8x96xbf16> to vector<8x8xbf16>
    %cst_37 = arith.constant dense<0.000000e+00> : vector<8x8xf32>
    %104 = tpu.matmul %101, %102, %cst_37 {dimension_numbers = #tpu.dot_dimension_numbers<[1], [1], [0], [0], [0, 0, 1, 0], [], []>} : vector<8x8xbf16>, vector<8x8xbf16>, vector<8x8xf32> -> vector<8x8xf32>
    %cst_38 = arith.constant 0.353553385 : f32
    %105 = vector.broadcast %cst_38 : f32 to vector<8x8xf32>
    %106 = arith.mulf %104, %105 : vector<8x8xf32>
    %107 = vector.broadcast %7 : vector<1x8xf32> to vector<8x8xf32>
    %108 = arith.addf %106, %107 : vector<8x8xf32>
    %cst_39 = arith.constant dense<0xFF800000> : vector<8xf32>
    %109 = vector.multi_reduction <maximumf>, %108, %cst_39 [1] : vector<8x8xf32> to vector<8xf32>
    %110 = vector.shape_cast %109 : vector<8xf32> to vector<8x1xf32>
    %111 = vector.broadcast %110 : vector<8x1xf32> to vector<8x8xf32>
    %112 = arith.subf %108, %111 : vector<8x8xf32>
    %113 = math.exp %112 : vector<8x8xf32>
    %cst_40 = arith.constant dense<0.000000e+00> : vector<8xf32>
    %114 = vector.multi_reduction <add>, %113, %cst_40 [1] : vector<8x8xf32> to vector<8xf32>
    %115 = vector.shape_cast %114 : vector<8xf32> to vector<8x1xf32>
    %116 = tpu.reciprocal %115 {approx = true} : vector<8x1xf32> -> vector<8x1xf32>
    %117 = vector.broadcast %116 : vector<8x1xf32> to vector<8x8xf32>
    %118 = arith.mulf %113, %117 : vector<8x8xf32>
    %119 = arith.truncf %118 : vector<8x8xf32> to vector<8x8xbf16>
    %cst_41 = arith.constant dense<0.000000e+00> : vector<8x8xf32>
    %120 = tpu.matmul %119, %103, %cst_41 {dimension_numbers = #tpu.dot_dimension_numbers<[1], [0], [0], [1], [0, 0, 1, 1], [], []>} : vector<8x8xbf16>, vector<8x8xbf16>, vector<8x8xf32> -> vector<8x8xf32>
    %121 = tpu.concatenate %60, %80, %100, %120 in 1 : vector<8x8xf32>, vector<8x8xf32>, vector<8x8xf32>, vector<8x8xf32> -> vector<8x32xf32>
    %122 = arith.truncf %121 : vector<8x32xf32> to vector<8x32xbf16>
    %c0_42 = arith.constant 0 : index
    %c0_43 = arith.constant 0 : index
    %c0_44 = arith.constant 0 : index
    %123 = vector.load %arg6[%c0_42, %c0_43, %c0_44] : memref<1x32x32xbf16, #tpu.memory_space<vmem>>, vector<1x32x32xbf16>
    %124 = vector.shape_cast %123 : vector<1x32x32xbf16> to vector<32x32xbf16>
    %cst_45 = arith.constant dense<0.000000e+00> : vector<8x32xf32>
    %125 = tpu.matmul %122, %124, %cst_45 {dimension_numbers = #tpu.dot_dimension_numbers<[1], [0], [0], [1], [0, 0, 1, 1], [], []>} : vector<8x32xbf16>, vector<32x32xbf16>, vector<8x32xf32> -> vector<8x32xf32>
    %c0_46 = arith.constant 0 : index
    %c0_47 = arith.constant 0 : index
    %c0_48 = arith.constant 0 : index
    %126 = vector.load %arg7[%c0_46, %c0_47, %c0_48] : memref<1x1x32xf32, #tpu.memory_space<vmem>>, vector<1x1x32xf32>
    %127 = vector.shape_cast %126 : vector<1x1x32xf32> to vector<1x32xf32>
    %128 = vector.broadcast %127 : vector<1x32xf32> to vector<8x32xf32>
    %129 = arith.addf %125, %128 : vector<8x32xf32>
    %130 = arith.addf %5, %129 : vector<8x32xf32>
    %c0_49 = arith.constant 0 : index
    %c0_50 = arith.constant 0 : index
    %c0_51 = arith.constant 0 : index
    %131 = vector.load %arg14[%c0_49, %c0_50, %c0_51] : memref<1x1x32xf32, #tpu.memory_space<vmem>>, vector<1x1x32xf32>
    %132 = vector.shape_cast %131 : vector<1x1x32xf32> to vector<1x32xf32>
    %c0_52 = arith.constant 0 : index
    %c0_53 = arith.constant 0 : index
    %c0_54 = arith.constant 0 : index
    %133 = vector.load %arg15[%c0_52, %c0_53, %c0_54] : memref<1x1x32xf32, #tpu.memory_space<vmem>>, vector<1x1x32xf32>
    %134 = vector.shape_cast %133 : vector<1x1x32xf32> to vector<1x32xf32>
    %cst_55 = arith.constant dense<0.000000e+00> : vector<8xf32>
    %135 = vector.multi_reduction <add>, %130, %cst_55 [1] : vector<8x32xf32> to vector<8xf32>
    %136 = vector.shape_cast %135 : vector<8xf32> to vector<8x1xf32>
    %cst_56 = arith.constant 3.200000e+01 : f32
    %137 = vector.broadcast %cst_56 : f32 to vector<8x1xf32>
    %138 = arith.divf %136, %137 : vector<8x1xf32>
    %139 = vector.broadcast %138 : vector<8x1xf32> to vector<8x32xf32>
    %140 = arith.subf %130, %139 : vector<8x32xf32>
    %141 = arith.mulf %140, %140 : vector<8x32xf32>
    %cst_57 = arith.constant dense<0.000000e+00> : vector<8xf32>
    %142 = vector.multi_reduction <add>, %141, %cst_57 [1] : vector<8x32xf32> to vector<8xf32>
    %143 = vector.shape_cast %142 : vector<8xf32> to vector<8x1xf32>
    %cst_58 = arith.constant 0.0322580636 : f32
    %144 = vector.broadcast %cst_58 : f32 to vector<8x1xf32>
    %145 = arith.mulf %143, %144 : vector<8x1xf32>
    %146 = math.sqrt %145 : vector<8x1xf32>
    %147 = vector.broadcast %132 : vector<1x32xf32> to vector<8x32xf32>
    %148 = arith.mulf %147, %140 : vector<8x32xf32>
    %cst_59 = arith.constant 9.99999997E-7 : f32
    %149 = vector.broadcast %cst_59 : f32 to vector<8x1xf32>
    %150 = arith.addf %146, %149 : vector<8x1xf32>
    %151 = vector.broadcast %150 : vector<8x1xf32> to vector<8x32xf32>
    %152 = arith.divf %148, %151 : vector<8x32xf32>
    %153 = vector.broadcast %134 : vector<1x32xf32> to vector<8x32xf32>
    %154 = arith.addf %152, %153 : vector<8x32xf32>
    %155 = arith.truncf %154 : vector<8x32xf32> to vector<8x32xbf16>
    %c0_60 = arith.constant 0 : index
    %c0_61 = arith.constant 0 : index
    %c0_62 = arith.constant 0 : index
    %156 = vector.load %arg10[%c0_60, %c0_61, %c0_62] : memref<1x32x64xbf16, #tpu.memory_space<vmem>>, vector<1x32x64xbf16>
    %157 = vector.shape_cast %156 : vector<1x32x64xbf16> to vector<32x64xbf16>
    %cst_63 = arith.constant dense<0.000000e+00> : vector<8x64xf32>
    %158 = tpu.matmul %155, %157, %cst_63 {dimension_numbers = #tpu.dot_dimension_numbers<[1], [0], [0], [1], [0, 0, 1, 1], [], []>} : vector<8x32xbf16>, vector<32x64xbf16>, vector<8x64xf32> -> vector<8x64xf32>
    %c0_64 = arith.constant 0 : index
    %c0_65 = arith.constant 0 : index
    %c0_66 = arith.constant 0 : index
    %159 = vector.load %arg11[%c0_64, %c0_65, %c0_66] : memref<1x1x64xf32, #tpu.memory_space<vmem>>, vector<1x1x64xf32>
    %160 = vector.shape_cast %159 : vector<1x1x64xf32> to vector<1x64xf32>
    %161 = vector.broadcast %160 : vector<1x64xf32> to vector<8x64xf32>
    %162 = arith.addf %158, %161 : vector<8x64xf32>
    %cst_67 = arith.constant 0.000000e+00 : f32
    %163 = vector.broadcast %cst_67 : f32 to vector<8x64xf32>
    %164 = arith.maximumf %162, %163 : vector<8x64xf32>
    %165 = arith.truncf %164 : vector<8x64xf32> to vector<8x64xbf16>
    %c0_68 = arith.constant 0 : index
    %c0_69 = arith.constant 0 : index
    %c0_70 = arith.constant 0 : index
    %166 = vector.load %arg12[%c0_68, %c0_69, %c0_70] : memref<1x64x32xbf16, #tpu.memory_space<vmem>>, vector<1x64x32xbf16>
    %167 = vector.shape_cast %166 : vector<1x64x32xbf16> to vector<64x32xbf16>
    %cst_71 = arith.constant dense<0.000000e+00> : vector<8x32xf32>
    %168 = tpu.matmul %165, %167, %cst_71 {dimension_numbers = #tpu.dot_dimension_numbers<[1], [0], [0], [1], [0, 0, 1, 1], [], []>} : vector<8x64xbf16>, vector<64x32xbf16>, vector<8x32xf32> -> vector<8x32xf32>
    %c0_72 = arith.constant 0 : index
    %c0_73 = arith.constant 0 : index
    %c0_74 = arith.constant 0 : index
    %169 = vector.load %arg13[%c0_72, %c0_73, %c0_74] : memref<1x1x32xf32, #tpu.memory_space<vmem>>, vector<1x1x32xf32>
    %170 = vector.shape_cast %169 : vector<1x1x32xf32> to vector<1x32xf32>
    %171 = vector.broadcast %170 : vector<1x32xf32> to vector<8x32xf32>
    %172 = arith.addf %168, %171 : vector<8x32xf32>
    %173 = arith.addf %130, %172 : vector<8x32xf32>
    %174 = arith.index_cast %arg1 : i32 to index
    %c0_75 = arith.constant 0 : index
    %c0_76 = arith.constant 0 : index
    %175 = vector.load %arg19[%174, %c0_75, %c0_76] : memref<2x8x32xf32, #tpu.memory_space<vmem>>, vector<1x8x32xf32>
    %176 = vector.shape_cast %175 : vector<1x8x32xf32> to vector<8x32xf32>
    %177 = vector.shape_cast %173 : vector<8x32xf32> to vector<1x8x32xf32>
    tpu.vector_store %arg19[%174, %c0_75, %c0_76], %177 {strides = array<i32>} : memref<2x8x32xf32, #tpu.memory_space<vmem>>, vector<1x8x32xf32>,
    %c1_i32 = arith.constant 1 : i32
    %178 = arith.cmpi eq, %arg0, %c1_i32 : i32
    %179 = arith.extui %178 : i1 to i32
    %c0_i32_77 = arith.constant 0 : i32
    %180 = arith.cmpi ne, %179, %c0_i32_77 : i32
    scf.if %180 {
      %c0_78 = arith.constant 0 : index
      %c0_79 = arith.constant 0 : index
      %181 = vector.load %arg16[%c0_78, %c0_79] : memref<1x32xf32, #tpu.memory_space<vmem>>, vector<1x32xf32>
      %c0_80 = arith.constant 0 : index
      %c0_81 = arith.constant 0 : index
      %182 = vector.load %arg17[%c0_80, %c0_81] : memref<1x32xf32, #tpu.memory_space<vmem>>, vector<1x32xf32>
      %cst_82 = arith.constant dense<0.000000e+00> : vector<8xf32>
      %183 = vector.multi_reduction <add>, %173, %cst_82 [1] : vector<8x32xf32> to vector<8xf32>
      %184 = vector.shape_cast %183 : vector<8xf32> to vector<8x1xf32>
      %cst_83 = arith.constant 3.200000e+01 : f32
      %185 = vector.broadcast %cst_83 : f32 to vector<8x1xf32>
      %186 = arith.divf %184, %185 : vector<8x1xf32>
      %187 = vector.broadcast %186 : vector<8x1xf32> to vector<8x32xf32>
      %188 = arith.subf %173, %187 : vector<8x32xf32>
      %189 = arith.mulf %188, %188 : vector<8x32xf32>
      %cst_84 = arith.constant dense<0.000000e+00> : vector<8xf32>
      %190 = vector.multi_reduction <add>, %189, %cst_84 [1] : vector<8x32xf32> to vector<8xf32>
      %191 = vector.shape_cast %190 : vector<8xf32> to vector<8x1xf32>
      %cst_85 = arith.constant 0.0322580636 : f32
      %192 = vector.broadcast %cst_85 : f32 to vector<8x1xf32>
      %193 = arith.mulf %191, %192 : vector<8x1xf32>
      %194 = math.sqrt %193 : vector<8x1xf32>
      %195 = vector.broadcast %181 : vector<1x32xf32> to vector<8x32xf32>
      %196 = arith.mulf %195, %188 : vector<8x32xf32>
      %cst_86 = arith.constant 9.99999997E-7 : f32
      %197 = vector.broadcast %cst_86 : f32 to vector<8x1xf32>
      %198 = arith.addf %194, %197 : vector<8x1xf32>
      %199 = vector.broadcast %198 : vector<8x1xf32> to vector<8x32xf32>
      %200 = arith.divf %196, %199 : vector<8x32xf32>
      %201 = vector.broadcast %182 : vector<1x32xf32> to vector<8x32xf32>
      %202 = arith.addf %200, %201 : vector<8x32xf32>
      %c0_87 = arith.constant 0 : index
      %c0_88 = arith.constant 0 : index
      %c0_89 = arith.constant 0 : index
      %203 = vector.load %arg18[%c0_87, %c0_88, %c0_89] : memref<1x8x32xf32, #tpu.memory_space<vmem>>, vector<1x8x32xf32>
      %204 = vector.shape_cast %203 : vector<1x8x32xf32> to vector<8x32xf32>
      %205 = vector.shape_cast %202 : vector<8x32xf32> to vector<1x8x32xf32>
      tpu.vector_store %arg18[%c0_87, %c0_88, %c0_89], %205 {strides = array<i32>} : memref<1x8x32xf32, #tpu.memory_space<vmem>>, vector<1x8x32xf32>,
    } else {
    }
    return
  }
  func.func @transform_0(%arg0: i32, %arg1: i32) -> (i32, i32, i32) {
    %c0_i32 = arith.constant 0 : i32
    %c0_i32_0 = arith.constant 0 : i32
    %c0_i32_1 = arith.constant 0 : i32
    return %arg1, %c0_i32, %c0_i32_0 : i32, i32, i32
  }
  func.func @transform_1(%arg0: i32, %arg1: i32) -> (i32, i32, i32) {
    %c0_i32 = arith.constant 0 : i32
    %c0_i32_0 = arith.constant 0 : i32
    %c0_i32_1 = arith.constant 0 : i32
    return %arg1, %c0_i32, %c0_i32_0 : i32, i32, i32
  }
  func.func @transform_2(%arg0: i32, %arg1: i32) -> (i32, i32, i32) {
    %c0_i32 = arith.constant 0 : i32
    %c0_i32_0 = arith.constant 0 : i32
    %c0_i32_1 = arith.constant 0 : i32
    return %arg0, %c0_i32, %c0_i32_0 : i32, i32, i32
  }
  func.func @transform_3(%arg0: i32, %arg1: i32) -> (i32, i32, i32) {
    %c0_i32 = arith.constant 0 : i32
    %c0_i32_0 = arith.constant 0 : i32
    %c0_i32_1 = arith.constant 0 : i32
    return %arg0, %c0_i32, %c0_i32_0 : i32, i32, i32
  }
  func.func @transform_4(%arg0: i32, %arg1: i32) -> (i32, i32, i32) {
    %c0_i32 = arith.constant 0 : i32
    %c0_i32_0 = arith.constant 0 : i32
    %c0_i32_1 = arith.constant 0 : i32
    return %arg0, %c0_i32, %c0_i32_0 : i32, i32, i32
  }
  func.func @transform_5(%arg0: i32, %arg1: i32) -> (i32, i32, i32) {
    %c0_i32 = arith.constant 0 : i32
    %c0_i32_0 = arith.constant 0 : i32
    %c0_i32_1 = arith.constant 0 : i32
    return %arg0, %c0_i32, %c0_i32_0 : i32, i32, i32
  }
  func.func @transform_6(%arg0: i32, %arg1: i32) -> (i32, i32, i32) {
    %c0_i32 = arith.constant 0 : i32
    %c0_i32_0 = arith.constant 0 : i32
    %c0_i32_1 = arith.constant 0 : i32
    return %arg0, %c0_i32, %c0_i32_0 : i32, i32, i32
  }
  func.func @transform_7(%arg0: i32, %arg1: i32) -> (i32, i32, i32) {
    %c0_i32 = arith.constant 0 : i32
    %c0_i32_0 = arith.constant 0 : i32
    %c0_i32_1 = arith.constant 0 : i32
    return %arg0, %c0_i32, %c0_i32_0 : i32, i32, i32
  }
  func.func @transform_8(%arg0: i32, %arg1: i32) -> (i32, i32, i32) {
    %c0_i32 = arith.constant 0 : i32
    %c0_i32_0 = arith.constant 0 : i32
    %c0_i32_1 = arith.constant 0 : i32
    return %arg0, %c0_i32, %c0_i32_0 : i32, i32, i32
  }
  func.func @transform_9(%arg0: i32, %arg1: i32) -> (i32, i32, i32) {
    %c0_i32 = arith.constant 0 : i32
    %c0_i32_0 = arith.constant 0 : i32
    %c0_i32_1 = arith.constant 0 : i32
    return %arg0, %c0_i32, %c0_i32_0 : i32, i32, i32
  }
  func.func @transform_10(%arg0: i32, %arg1: i32) -> (i32, i32, i32) {
    %c0_i32 = arith.constant 0 : i32
    %c0_i32_0 = arith.constant 0 : i32
    %c0_i32_1 = arith.constant 0 : i32
    return %arg0, %c0_i32, %c0_i32_0 : i32, i32, i32
  }
  func.func @transform_11(%arg0: i32, %arg1: i32) -> (i32, i32, i32) {
    %c0_i32 = arith.constant 0 : i32
    %c0_i32_0 = arith.constant 0 : i32
    %c0_i32_1 = arith.constant 0 : i32
    return %arg0, %c0_i32, %c0_i32_0 : i32, i32, i32
  }
  func.func @transform_12(%arg0: i32, %arg1: i32) -> (i32, i32, i32) {
    %c0_i32 = arith.constant 0 : i32
    %c0_i32_0 = arith.constant 0 : i32
    %c0_i32_1 = arith.constant 0 : i32
    return %arg0, %c0_i32, %c0_i32_0 : i32, i32, i32
  }
  func.func @transform_13(%arg0: i32, %arg1: i32) -> (i32, i32, i32) {
    %c0_i32 = arith.constant 0 : i32
    %c0_i32_0 = arith.constant 0 : i32
    %c0_i32_1 = arith.constant 0 : i32
    return %arg0, %c0_i32, %c0_i32_0 : i32, i32, i32
  }
  func.func @transform_14(%arg0: i32, %arg1: i32) -> (i32, i32) {
    %c0_i32 = arith.constant 0 : i32
    %c0_i32_0 = arith.constant 0 : i32
    %c0_i32_1 = arith.constant 0 : i32
    return %c0_i32, %c0_i32_0 : i32, i32
  }
  func.func @transform_15(%arg0: i32, %arg1: i32) -> (i32, i32) {
    %c0_i32 = arith.constant 0 : i32
    %c0_i32_0 = arith.constant 0 : i32
    %c0_i32_1 = arith.constant 0 : i32
    return %c0_i32, %c0_i32_0 : i32, i32
  }
  func.func @transform_16(%arg0: i32, %arg1: i32) -> (i32, i32, i32) {
    %c0_i32 = arith.constant 0 : i32
    %c0_i32_0 = arith.constant 0 : i32
    %c0_i32_1 = arith.constant 0 : i32
    return %arg1, %c0_i32, %c0_i32_0 : i32, i32, i32
  }
}

</mosaic_0001>

<bundles_post_ra>
// kernel: tpu_custom_call.1
= control target key start
LH: loop header
LB: loop body
LE: loop exit
PB: predicated region body
PF: predicated region fallthrough
CT: control target
= control target key end

     0   :  { %s3352_s0 = inlined_call_operand.hbm [shape: f32[2,8,32], index: 0, kind: input, shape index: {}]   ;;  %s3353_s1 = inlined_call_operand.vmem [shape: f32[2,1,8], index: 1, kind: input, shape index: {}]   ;;  %s3354_s2 = inlined_call_operand.vmem [shape: bf16[2,32,96], index: 2, kind: input, shape index: {}]   ;;  %s3355_s3 = inlined_call_operand.vmem [shape: f32[2,1,96], index: 3, kind: input, shape index: {}]   ;;  %s3356_s4 = inlined_call_operand.vmem [shape: bf16[2,32,32], index: 4, kind: input, shape index: {}]   ;;  %s3357_s5 = inlined_call_operand.hbm [shape: f32[2,1,32], index: 5, kind: input, shape index: {}]   ;;  %s3358_s6 = inlined_call_operand.hbm [shape: f32[2,1,32], index: 6, kind: input, shape index: {}]   ;;  %s3359_s7 = inlined_call_operand.hbm [shape: f32[2,1,32], index: 7, kind: input, shape index: {}]   ;;  %s3360_s8 = inlined_call_operand.vmem [shape: bf16[2,32,64], index: 8, kind: input, shape index: {}]   ;;  %s3361_s9 = inlined_call_operand.hbm [shape: f32[2,1,64], index: 9, kind: input, shape index: {}]   ;;  %s3362_s10 = inlined_call_operand.vmem [shape: bf16[2,64,32], index: 10, kind: input, shape index: {}]   ;;  %s3363_s11 = inlined_call_operand.vmem [shape: f32[2,1,32], index: 11, kind: input, shape index: {}]   ;;  %s3364_s12 = inlined_call_operand.vmem [shape: f32[2,1,32], index: 12, kind: input, shape index: {}]   ;;  %s3365_s13 = inlined_call_operand.vmem [shape: f32[2,1,32], index: 13, kind: input, shape index: {}]   ;;  %s3366_s14 = inlined_call_operand.vmem [shape: f32[1,32], index: 14, kind: input, shape index: {}]   ;;  %s3367_s15 = inlined_call_operand.vmem [shape: f32[1,32], index: 15, kind: input, shape index: {}]   ;;  %s3368_s16 = inlined_call_operand.hbm [shape: f32[2,8,32], index: 16, kind: output, shape index: {}]  }
   0x1   :  { %3395 = sst [smem:[#allocation31_spill]] %s3352_s0 }
   0x2   :  { %3396 = sst [smem:[#allocation32_spill]] %s3353_s1 }
   0x3   :  { %3397 = sst [smem:[#allocation33_spill]] %s3354_s2 }
   0x4   :  { %3398 = sst [smem:[#allocation34_spill]] %s3355_s3 }
   0x5   :  { %3399 = sst [smem:[#allocation35_spill]] %s3356_s4 }
   0x6   :  { %3400 = sst [smem:[#allocation36_spill]] %s3357_s5 }
   0x7   :  { %3401 = sst [smem:[#allocation37_spill]] %s3358_s6 }
   0x8   :  { %3402 = sst [smem:[#allocation38_spill]] %s3359_s7 }
   0x9   :  { %3403 = sst [smem:[#allocation39_spill]] %s3360_s8 }
   0xa   :  { %3404 = sst [smem:[#allocation40_spill]] %s3361_s9 }
   0xb   :  { %3405 = sst [smem:[#allocation41_spill]] %s3362_s10 }
   0xc   :  { %3406 = sst [smem:[#allocation42_spill]] %s3363_s11 }
   0xd   :  { %3407 = sst [smem:[#allocation43_spill]] %s3364_s12 }
   0xe   :  { %3408 = sst [smem:[#allocation44_spill]] %s3365_s13 }
   0xf   :  { %3409 = sst [smem:[#allocation45_spill]] %s3366_s14 }
  0x10   :  { %3410 = sst [smem:[#allocation46_spill]] %s3367_s15 }
  0x11   :  { %3411 = sst [smem:[#allocation47_spill]] %s3368_s16 }
  0x12   :  { %21 = vsyncpa [#allocation4], 0 }
  0x13   :  { %23 = vsyncpa [#allocation4 + $0x1], 0 }
  0x14   :  { %24 = vsyncpa [#allocation7], 0 }
  0x15   :  { %26 = vsyncpa [#allocation7 + $0x1], 0 }
  0x16   :  { %27 = vsyncpa [#allocation10], 0 }
  0x17   :  { %29 = vsyncpa [#allocation10 + $0x1], 0 }
  0x18   :  { %30 = vsyncpa [#allocation5], 0 }
  0x19   :  { %32 = vsyncpa [#allocation5 + $0x1], 0  ;;  %s2731_s21 = smov 0   ;;  %s2733_s22 = smov 0  }
  0x1a   :  { %s2735_s23 = smov 0   ;;  %s2737_s24 = smov 0  }
  0x1b   :  { %s2739_s25 = smov 0   ;;  %s2741_s26 = smov 0  }
  0x1c   :  { %s2743_s27 = smov 0   ;;  %s2745_s28 = smov 0  }
  0x1d   :  { %s2747_s29 = smov 0   ;;  %s2749_s30 = smov 0  }
  0x1e   :  { %s2751_s0 = smov 0  }
  0x1f LB: > { %3412 = sst [smem:[#allocation17_spill]] %s2586_s22  ;;  %p3373_p0 = scmp.eq.s32.totalorder %s2622_s0, 0  ;;  %s2622_s0 = sphi %s2751_s0, %s38_s0   ;;  %s2618_s30 = sphi %s2749_s30, %s3497_s30   ;;  %s2614_s29 = sphi %s2747_s29, %s3496_s29   ;;  %s2610_s28 = sphi %s2745_s28, %s3495_s28   ;;  %s2606_s27 = sphi %s2743_s27, %s3494_s27   ;;  %s2602_s26 = sphi %s2741_s26, %s3493_s26   ;;  %s2598_s25 = sphi %s2739_s25, %s3492_s25   ;;  %s2594_s24 = sphi %s2737_s24, %s3491_s24   ;;  %s2590_s23 = sphi %s2735_s23, %s3490_s23   ;;  %s2586_s22 = sphi %s2733_s22, %s3489_s22   ;;  %s2582_s21 = sphi %s2731_s21, %s3488_s21  }
  0x20   : > { %3413 = sst [smem:[#allocation18_spill]] %s2590_s23  ;;  %p194_p1 = scmp.ne.s32.totalorder %s2590_s23, %s2586_s22 }
  0x21   : > { %3414 = sst [smem:[#allocation19_spill]] %s2598_s25  ;;  %p3371_p4 = scmp.lt.s32.totalorder %s2622_s0, 4 }
  0x22   : > { %3415 = sst [smem:[#allocation20_spill]] %s2602_s26  ;;  %p196_p3 = por %p194_p1, %p3373_p0 }
  0x23   : > { %3416 = sst [smem:[#allocation21_spill]] %s2606_s27  ;;  %s3372_s19 = sand.u32 1, %s2622_s0  }
  0x24   : > { %3417 = sst [smem:[#allocation22_spill]] %s2610_s28  ;;  %s2798_s20 = sand.u32 1, %s2590_s23  }
  0x25   : > { %3418 = sst [smem:[#allocation23_spill]] %s2614_s29  ;;  %s2801_s16 = sshll.u32 %s2618_s30, 4 }
  0x26   : > { %3419 = sst [smem:[#allocation24_spill]] %s2618_s30  ;;  %s555_s15 = scalar_lea.vmem [#allocation6], %s2798_s20 }
  0x27   : > { %s562_s14 = sshll.u32 %s555_s15, 4  ;;  %s3420_s5 = sld [smem:[#allocation36_spill]]  ;;  %s2810_s14 = int_to_ptr.vmem [resolvable:$true] %s562_s14 }
  0x28   : > { %p2814_p5 = pnand %p3371_p4, %p196_p3  ;;  %s2822_s15 = scalar_lea.sflag [#allocation7], %s3372_s19 }
  0x2a   : > { %s3421_s18 = scalar_select %p2814_p5, 1, 0 }
  0x2b   : > { %p2828_p9 = pneg %p2814_p5 }
  0x2d   : > { %s2808_s12 = scalar_lea.hbm %s3420_s5, %s2801_s16  ;;  %s2347_s8 = scalar_lea.hbm %s3420_s5, 32 }
  0x2e   : > { %s2342_s13 = scalar_lea.hbm %s2808_s12, 16  ;;  %p2348_p12 = scmp.lt.u32.totalorder %s2808_s12, %s3420_s5 }
  0x2f   : > { %p2343_p8 = scmp.ne.s32.totalorder %s2808_s12, %s2342_s13  ;;  %p2349_p13 = scmp.lt.u32.totalorder %s2347_s8, %s2342_s13 }
  0x30   : > { %p2351_p3 = scmp.lt.u32.totalorder %s2342_s13, %s2808_s12 }
  0x31   : > { %p2345_p10 = pnand %p2828_p9, %p2343_p8  ;;  %p2350_p1 = por %p2349_p13, %p2348_p12 }
  0x33   : > { %p2346_p11 = pneg %p2345_p10  ;;  %p2352_p4 = por %p2351_p3, %p2350_p1 }
  0x35   : > { %p2353_p2 = pnand %p2352_p4, %p2346_p11 }
  0x37   : > { %2356 = shalt.err (!%p2353_p2)
}
  0x38   : > { %s2357_s19 = scalar_lea.vmem %s2810_s14, 16  ;;  %s2624_s10 = smov [#allocation6]  }
  0x39   : > { %p2358_p8 = scmp.ne.s32.totalorder %s2810_s14, %s2357_s19  ;;  %s2362_s11 = sshll.u32 %s2624_s10, 4  ;;  %s2363_s11 = int_to_ptr.vmem [resolvable:$false] %s2362_s11 }
  0x3a   : > { %s2364_s2 = scalar_lea.vmem %s2363_s11, 32  ;;  %p2365_p6 = scmp.lt.s32.totalorder %s2810_s14, %s2363_s11 }
  0x3b   : > { %p2360_p10 = pnand %p2358_p8, %p2828_p9  ;;  %p2366_p7 = scmp.lt.s32.totalorder %s2364_s2, %s2357_s19 }
  0x3d   : > { %p2361_p0 = pneg %p2360_p10  ;;  %p2367_p12 = por %p2366_p7, %p2365_p6 }
  0x3f   : > { %p2368_p13 = pnand %p2367_p12, %p2361_p0 }
  0x41   : > { %2371 = shalt.err (!%p2368_p13)
}
  0x42   : > { %2184 = dma.hbm_to_vmem [thread:$0]  (!%p2814_p5), %s2808_s12, 16, %s2810_s14, %s2822_s15  }
  0x43   : > { %p3423_p2 = scmp.lt.s32.totalorder %s2622_s0, 5  ;;  %p3424_p4 = scmp.ge.s32.totalorder %s2622_s0, 1 }
  0x44   : > { %s3426_s7 = sld [smem:[#allocation38_spill]]  ;;  %s589_s10 = scalar_lea.vmem [#allocation9], %s2798_s20 }
  0x45   : > { %p2856_p11 = pnand %p3424_p4, %p3423_p2  ;;  %s596_s11 = sshll.u32 %s589_s10, 4  ;;  %s597_s11 = int_to_ptr.vmem [resolvable:$true] %s596_s11 }
  0x46   : > { %s3427_s2 = sand.u32 1, %s2622_s0  }
  0x47   : > { %s3425_s4 = scalar_select %p2856_p11, 1, 0 }
  0x48   : > { %s2869_s12 = scalar_lea.sflag [#allocation10], %s3427_s2 }
  0x4a   : > { %s2864_s13 = scalar_lea.hbm %s3426_s7, %s2801_s16  ;;  %s2377_s8 = scalar_lea.hbm %s3426_s7, 32 }
  0x4b   : > { %s2372_s14 = scalar_lea.hbm %s2864_s13, 16  ;;  %p2378_p1 = scmp.lt.u32.totalorder %s2864_s13, %s3426_s7 }
  0x4c   : > { %p2373_p0 = scmp.ne.s32.totalorder %s2864_s13, %s2372_s14  ;;  %p2379_p3 = scmp.lt.u32.totalorder %s2377_s8, %s2372_s14 }
  0x4d   : > { %p2381_p10 = scmp.lt.u32.totalorder %s2372_s14, %s2864_s13 }
  0x4e   : > { %p2375_p6 = pnand %p2373_p0, %p2828_p9  ;;  %p2380_p8 = por %p2379_p3, %p2378_p1 }
  0x50   : > { %p2376_p7 = pneg %p2375_p6  ;;  %p2382_p12 = por %p2381_p10, %p2380_p8 }
  0x52   : > { %p2383_p13 = pnand %p2382_p12, %p2376_p7 }
  0x54   : > { %2386 = shalt.err (!%p2383_p13)
}
  0x55   : > { %s2387_s10 = scalar_lea.vmem %s597_s11, 16  ;;  %s2625_s2 = smov [#allocation9]  }
  0x56   : > { %p2388_p2 = scmp.ne.s32.totalorder %s597_s11, %s2387_s10  ;;  %s2392_s28 = sshll.u32 %s2625_s2, 4  ;;  %s2393_s28 = int_to_ptr.vmem [resolvable:$false] %s2392_s28 }
  0x57   : > { %s2394_s3 = scalar_lea.vmem %s2393_s28, 32  ;;  %p2395_p6 = scmp.lt.s32.totalorder %s597_s11, %s2393_s28 }
  0x58   : > { %p2390_p4 = pnand %p2388_p2, %p2828_p9  ;;  %p2396_p11 = scmp.lt.s32.totalorder %s2394_s3, %s2387_s10 }
  0x5a   : > { %p2391_p0 = pneg %p2390_p4  ;;  %p2397_p5 = por %p2396_p11, %p2395_p6 }
  0x5c   : > { %p2398_p1 = pnand %p2397_p5, %p2391_p0 }
  0x5e   : > { %2401 = shalt.err (!%p2398_p1)
}
  0x5f   : > { %p3428_p3 = scmp.ne.s32.totalorder %s3421_s18, 0  ;;  %s2890_s1 = sadd.s32 4294967295, %s2622_s0  }
  0x60   : > { %s1987_s5 = sadd.s32 4294967294, %s2622_s0   ;;  %s47_s28 = sadd.s32 1, %s2614_s29 }
  0x61   : > { %2190 = dma.hbm_to_vmem [thread:$0]  (!%p3428_p3), %s2864_s13, 16, %s597_s11, %s2869_s12  }
  0x62   : > { %s57_s14 = sadd.s32 1, %s2602_s26  ;;  %p48_p5 = scmp.ge.s32.totalorder %s47_s28, 2 }
  0x63   : > { %p64_p11 = scmp.ne.s32.totalorder %s2602_s26, %s2598_s25  ;;  %p3377_p7 = scmp.ne.s32.totalorder %s2598_s25, %s2594_s24 }
  0x64   : > { %p71_p8 = scmp.eq.s32.totalorder %s2890_s1, 0  ;;  %s3499_s28 = smov (%p48_p5, %s47_s28), 0 }
  0x65   : > { %3429 = sst [smem:[#allocation25_spill]] %s3499_s28  ;;  %s3430_s13 = sadd.s32 1, %s2618_s30 }
  0x66   : > { %s3501_s13 = smov (!%p48_p5, %s3430_s13), %s2618_s30  ;;  %s54_s11 = ssub.s32 %s2614_s29, %s3499_s28 }
  0x67   : > { %p3431_p10 = scmp.eq.s32.totalorder %s2622_s0, 0  ;;  %p52_p13 = scmp.ge.s32.totalorder %s3501_s13, 2 }
  0x68   : > { %p55_p2 = scmp.eq.s32.totalorder %s54_s11, 0  ;;  %p2919_p4 = por %p71_p8, %p3377_p7 }
  0x69   : > { %p2912_p12 = por %p3431_p10, %p64_p11  ;;  %p3434_p0 = scmp.ne.s32.totalorder %s2586_s22, %s2582_s21 }
  0x6a   : > { %s3433_s19 = scalar_select %p2919_p4, 1, 0 }
  0x6b   : > { %p2926_p6 = por %p3434_p0, %p71_p8  ;;  %s3503_s13 = smov (%p52_p13, %s3501_s13), 0 }
  0x6c   : > { %3436 = sst [smem:[#allocation26_spill]] %s3503_s13  ;;  %s184_s3 = ssub.s32 %s2618_s30, %s3503_s13 }
  0x6d   : > { %s3435_s10 = scalar_select %p2926_p6, 1, 0 }
  0x6e   : > { %s2933_s2 = scalar_select %p55_p2, %s2602_s26, %s57_s14  }
  0x6f   : > { %p474_p1 = scmp.eq.s32.totalorder %s2890_s1, 3  ;;  %p185_p5 = scmp.eq.s32.totalorder %s184_s3, 0 }
  0x70   : > { %3437 = sst [smem:[#allocation27_spill]] %s2933_s2  ;;  %p480_p10 = scmp.eq.s32.totalorder %s1987_s5, 3 }
  0x71   : > { %p2941_p7 = por %p474_p1, %p64_p11  ;;  %s506_s21 = sand.u32 1, %s2602_s26  }
  0x72   : > { %s3440_s7 = sadd.s32 1, %s2590_s23  ;;  %p3442_p8 = scmp.ne.s32.totalorder %s2598_s25, %s2594_s24 }
  0x73   : > { %s3438_s11 = scalar_select %p2941_p7, 1, 0 }
  0x74   : > { %s2949_s28 = scalar_select %p185_p5, %s2590_s23, %s3440_s7  }
  0x75   : > { %3439 = sst [smem:[#allocation28_spill]] %s3438_s11  ;;  %p2954_p13 = por %p480_p10, %p3442_p8 }
  0x76   : > { %3441 = sst [smem:[#allocation29_spill]] %s2949_s28  ;;  %s1990_s14 = sshll.u32 %s506_s21, 3 }
  0x77   : > { %s3443_s27 = scalar_select %p2954_p13, 1, 0 }
  0x78   : > { %s1991_s2 = sshll.u32 %s2614_s29, 7  ;;  %s3445_s3 = sld [smem:[#allocation31_spill]] }
  0x79   : > { %3444 = sst [smem:[#allocation30_spill]] %s3443_s27  ;;  %s510_s26 = scalar_lea.vmem [#allocation3], %s1990_s14 }
  0x7a   : > { %s517_s11 = sshll.u32 %s510_s26, 4  ;;  %p3446_p11 = scmp.lt.s32.totalorder %s2622_s0, 4  ;;  %s2972_s11 = int_to_ptr.vmem [resolvable:$true] %s517_s11 }
  0x7b   : > { %s3448_s6 = sld [smem:[#allocation37_spill]] }
  0x7c   : > { %p2968_p2 = pnand %p3446_p11, %p2912_p12 }
  0x7e   : > { %s2962_s5 = scalar_lea.hbm %s3445_s3, %s1991_s2  ;;  %s507_s2 = scalar_lea.sflag [#allocation4], %s506_s21 }
  0x7f   : > { %s2402_s28 = scalar_lea.hbm %s2962_s5, 128  ;;  %p2404_p1 = pneg %p2968_p2 }
  0x80   : > { %p2403_p0 = scmp.ne.s32.totalorder %s2962_s5, %s2402_s28  ;;  %s2407_s14 = scalar_lea.hbm %s3445_s3, 256 }
  0x81   : > { %s2978_s13 = scalar_lea.hbm %s3448_s6, %s2801_s16  ;;  %p2408_p10 = scmp.lt.u32.totalorder %s2962_s5, %s3445_s3 }
  0x82   : > { %p2405_p12 = pnand %p2404_p1, %p2403_p0  ;;  %p2409_p8 = scmp.lt.u32.totalorder %s2407_s14, %s2402_s28 }
  0x83   : > { %p2411_p13 = scmp.lt.u32.totalorder %s2402_s28, %s2962_s5 }
  0x84   : > { %p2406_p5 = pneg %p2405_p12  ;;  %p2410_p11 = por %p2409_p8, %p2408_p10 }
  0x86   : > { %p2412_p7 = por %p2411_p13, %p2410_p11 }
  0x88   : > { %p2413_p6 = pnand %p2412_p7, %p2406_p5 }
  0x8a   : > { %2416 = shalt.err (!%p2413_p6)
}
  0x8b   : > { %s2417_s29 = scalar_lea.vmem %s2972_s11, 128  ;;  %s2626_s21 = smov [#allocation3]  }
  0x8c   : > { %p2418_p0 = scmp.ne.s32.totalorder %s2972_s11, %s2417_s29  ;;  %s2422_s30 = sshll.u32 %s2626_s21, 4  ;;  %s2423_s30 = int_to_ptr.vmem [resolvable:$false] %s2422_s30 }
  0x8d   : > { %s2424_s23 = scalar_lea.vmem %s2423_s30, 256  ;;  %p2425_p3 = scmp.lt.s32.totalorder %s2972_s11, %s2423_s30 }
  0x8e   : > { %p2420_p12 = pnand %p2418_p0, %p2404_p1  ;;  %p2426_p10 = scmp.lt.s32.totalorder %s2424_s23, %s2417_s29 }
  0x90   : > { %p2421_p4 = pneg %p2420_p12  ;;  %p2427_p8 = por %p2426_p10, %p2425_p3 }
  0x92   : > { %p2428_p13 = pnand %p2427_p8, %p2421_p4 }
  0x94   : > { %2431 = shalt.err (!%p2428_p13)
}
  0x95   : > { %2181 = dma.hbm_to_vmem [thread:$0]  (!%p2968_p2), %s2962_s5, 128, %s2972_s11, %s507_s2  }
  0x96   : > { %s572_s27 = scalar_lea.vmem [#allocation8], %s2798_s20  ;;  %s3449_s9 = sld [smem:[#allocation40_spill]] }
  0x97   : > { %s579_s28 = sshll.u32 %s572_s27, 4  ;;  %s2432_s29 = scalar_lea.hbm %s2978_s13, 16  ;;  %s580_s28 = int_to_ptr.vmem [resolvable:$true] %s579_s28 }
  0x98   : > { %p2433_p3 = scmp.ne.s32.totalorder %s2978_s13, %s2432_s29  ;;  %s2437_s30 = scalar_lea.hbm %s3448_s6, 32 }
  0x99   : > { %p2438_p6 = scmp.lt.u32.totalorder %s2978_s13, %s3448_s6  ;;  %p2439_p2 = scmp.lt.u32.totalorder %s2437_s30, %s2432_s29 }
  0x9a   : > { %p2435_p7 = pnand %p2433_p3, %p2828_p9  ;;  %p2441_p5 = scmp.lt.u32.totalorder %s2432_s29, %s2978_s13 }
  0x9b   : > { %p2440_p1 = por %p2439_p2, %p2438_p6 }
  0x9c   : > { %s3010_s14 = scalar_lea.hbm %s3449_s9, %s2801_s16  ;;  %p2436_p4 = pneg %p2435_p7 }
  0x9d   : > { %p2442_p11 = por %p2441_p5, %p2440_p1 }
  0x9f   : > { %p2443_p0 = pnand %p2442_p11, %p2436_p4 }
  0xa1   : > { %2446 = shalt.err (!%p2443_p0)
}
  0xa2   : > { %s2447_s16 = scalar_lea.vmem %s580_s28, 16  ;;  %s2627_s11 = smov [#allocation8]  }
  0xa3   : > { %p2448_p12 = scmp.ne.s32.totalorder %s580_s28, %s2447_s16  ;;  %s2452_s5 = sshll.u32 %s2627_s11, 4  ;;  %s2453_s5 = int_to_ptr.vmem [resolvable:$false] %s2452_s5 }
  0xa4   : > { %s2454_s2 = scalar_lea.vmem %s2453_s5, 32  ;;  %p2455_p13 = scmp.lt.s32.totalorder %s580_s28, %s2453_s5 }
  0xa5   : > { %p2450_p10 = pnand %p2448_p12, %p2828_p9  ;;  %p2456_p3 = scmp.lt.s32.totalorder %s2454_s2, %s2447_s16 }
  0xa7   : > { %p2451_p8 = pneg %p2450_p10  ;;  %p2457_p7 = por %p2456_p3, %p2455_p13 }
  0xa9   : > { %p2458_p2 = pnand %p2457_p7, %p2451_p8 }
  0xab   : > { %2461 = shalt.err (!%p2458_p2)
}
  0xac   : > { %p3450_p6 = scmp.ne.s32.totalorder %s3421_s18, 0  ;;  %s614_s3 = scalar_lea.vmem [#allocation11], %s2798_s20 }
  0xad   : > { %s621_s27 = sshll.u32 %s614_s3, 4  ;;  %s2462_s26 = scalar_lea.hbm %s3010_s14, 16  ;;  %s622_s27 = int_to_ptr.vmem [resolvable:$true] %s621_s27 }
  0xae   : > { %2187 = dma.hbm_to_vmem [thread:$0]  (!%p3450_p6), %s2978_s13, 16, %s580_s28, %s2822_s15  }
  0xaf   : > { %p2463_p4 = scmp.ne.s32.totalorder %s3010_s14, %s2462_s26  ;;  %s2467_s7 = scalar_lea.hbm %s3449_s9, 32 }
  0xb0   : > { %p2468_p11 = scmp.lt.u32.totalorder %s3010_s14, %s3449_s9  ;;  %p2469_p0 = scmp.lt.u32.totalorder %s2467_s7, %s2462_s26 }
  0xb1   : > { %p2465_p1 = pnand %p2463_p4, %p2828_p9  ;;  %p2471_p10 = scmp.lt.u32.totalorder %s2462_s26, %s3010_s14 }
  0xb2   : > { %p2470_p12 = por %p2469_p0, %p2468_p11 }
  0xb3   : > { %p2466_p5 = pneg %p2465_p1 }
  0xb4   : > { %p2472_p8 = por %p2471_p10, %p2470_p12 }
  0xb6   : > { %p2473_p13 = pnand %p2472_p8, %p2466_p5 }
  0xb8   : > { %2476 = shalt.err (!%p2473_p13)
}
  0xb9   : > { %s2477_s20 = scalar_lea.vmem %s622_s27, 16  ;;  %s2628_s15 = smov [#allocation11]  }
  0xba   : > { %p2478_p3 = scmp.ne.s32.totalorder %s622_s27, %s2477_s20  ;;  %s2482_s13 = sshll.u32 %s2628_s15, 4  ;;  %s2483_s13 = int_to_ptr.vmem [resolvable:$false] %s2482_s13 }
  0xbb   : > { %s2484_s28 = scalar_lea.vmem %s2483_s13, 32  ;;  %p2485_p4 = scmp.lt.s32.totalorder %s622_s27, %s2483_s13 }
  0xbc   : > { %p2480_p7 = pnand %p2478_p3, %p2828_p9  ;;  %p2486_p1 = scmp.lt.s32.totalorder %s2484_s28, %s2477_s20 }
  0xbe   : > { %p2481_p2 = pneg %p2480_p7  ;;  %p2487_p6 = por %p2486_p1, %p2485_p4 }
  0xc0   : > { %p2488_p0 = pnand %p2487_p6, %p2481_p2 }
  0xc2   : > { %2491 = shalt.err (!%p2488_p0)
}
  0xc3   : > { %p3451_p11 = scmp.ne.s32.totalorder %s3421_s18, 0  ;;  %p3452_p5 = scmp.ne.s32.totalorder %s3425_s4, 0 }
  0xc4   : > { %s3052_s17 = sand.u32 (!%p3452_p5), 1, %s2598_s25   ;;  %p3453_p9 = scmp.ne.s32.totalorder (!%p3452_p5), %s3433_s19, 0 }
  0xc5   : > { %2193 = dma.hbm_to_vmem [thread:$0]  (!%p3451_p11), %s3010_s14, 16, %s622_s27, %s2869_s12  }
  0xc6   : > { %656 = sbr.rel (%p3452_p5) target bundleno = 3162 (0xc5a), region = 84  ;;  %s3392_s23 = sshll.u32 (!%p3452_p5), %s3052_s17, 3 }
  0xc7   : > { %s659_s16 = scalar_lea.sflag (!%p3452_p5), [#allocation4], %s3052_s17  ;;  %s3058_s11 = scalar_lea.vmem (!%p3452_p5), [#allocation3], %s3392_s23 }
  0xcd   : > { %2565 = dma.done.wait (%p3453_p9), %s659_s16, 128  }
  0xce   : > { %2567 = vsyncadd (%p3453_p9), %s659_s16, 4294967168  ;;  %s667_s18 = sand.u32 1, %s2890_s1   ;;  %s3066_s4 = sand.u32 1, %s2586_s22  }
  0xcf   : > { %s668_s12 = scalar_lea.sflag [#allocation7], %s667_s18  ;;  %p3454_p6 = scmp.ne.s32.totalorder %s3435_s10, 0 }
  0xd1   : > { %2569 = dma.done.wait (%p3454_p6), %s668_s12, 32  }
  0xd2   : > { %2571 = vsyncadd (%p3454_p6), %s668_s12, 4294967264  ;;  %s684_s19 = scalar_lea.sflag [#allocation10], %s667_s18 }
  0xd3   : > { %2573 = dma.done.wait (%p3454_p6), %s684_s19, 32  }
  0xd4   : > { %2575 = vsyncadd (%p3454_p6), %s684_s19, 4294967264  ;;  %s3455_s1 = sld [smem:[#allocation21_spill]]  ;;  %s3456_s3 = sld [smem:[#allocation22_spill]] }
  0xd5   : > { %s3459_s16 = sld [smem:[#allocation33_spill]]  ;;  %s3460_s26 = sld [smem:[#allocation35_spill]] }
  0xd6   : > { %s3461_s5 = sld [smem:[#allocation39_spill]]  ;;  %s3462_s21 = sld [smem:[#allocation41_spill]] }
  0xd7   : > { %s3463_s28 = sld [smem:[#allocation42_spill]]  ;;  %s3464_s12 = sld [smem:[#allocation43_spill]] }
  0xd8   : > { %s3465_s22 = sld [smem:[#allocation44_spill]]  ;;  %s3466_s2 = sshll.u32 %s3052_s17, 3 }
  0xda   : > { %p794_p12 = scmp.lt.s32.totalorder %s3455_s1, 1  ;;  %p797_p10 = scmp.lt.s32.totalorder %s3456_s3, 1 }
  0xdb   : > { %p2007_p8 = scmp.ne.s32.totalorder %s3456_s3, 0 }
  0xdc   : > { %s3505_s1 = smov (!%p794_p12, %s3455_s1), 1  ;;  %s3467_s6 = sld [smem:[#allocation21_spill]] (!%p2007_p8)  ;;  %v834_v0 = vld [vmem:[%s3058_s11] sm:$0xff] (!%p2007_p8)  ;;  %vm837_vm0 = vcmask (!%p2007_p8), 261120  }
  0xdd   : > { %s3085_s27 = scalar_select %p797_p10, %s3456_s3, 1 }
  0xde   : > { %833 = sbr.rel (%p2007_p8) target bundleno = 231 (0xe7), region = 108 }
  0xdf   : > { %s2048_s7 = sshll.u32 %s3085_s27, 4  ;;  %s2051_s29 = sshll.u32 %s3085_s27, 5 }
  0xe0   : > { %s3099_s18 = scalar_lea.vmem %s3459_s16, %s2048_s7  ;;  %s3104_s8 = scalar_lea.vmem %s3460_s26, %s2048_s7 }
  0xe1   : > { %s3109_s23 = scalar_lea.vmem %s3461_s5, %s2048_s7  ;;  %s3115_s30 = scalar_lea.vmem %s3462_s21, %s2051_s29 }
  0xe2   : > { %s822_s16 = scalar_lea.vmem %s3463_s28, %s3085_s27  ;;  %s825_s19 = scalar_lea.vmem %s3464_s12, %s3085_s27 }
  0xe3   : > { %s828_s14 = scalar_lea.vmem %s3465_s22, %s3085_s27  ;;  %s694_s5 = scalar_lea.vmem [#allocation11], %s3066_s4 }
  0xe4   : > { %s3132_s7 = scalar_lea.vmem [#allocation12], %s3466_s2  ;;  %s2008_s10 = sshll.u32 (!%p2007_p8), %s3467_s6, 3 }
  0xe5   : > { %s836_s29 = scalar_lea.vmem [#allocation2], %s2008_s10 }
  0xe6   : > { %838 = vst.msk [vmem:[%s836_s29] sm:$0xff] %vm837_vm0, %v834_v0 }
  0xe7 PF: > { %s3468_s9 = sld [smem:[#allocation21_spill]]  ;;  %vm845_vm1 = vcmask 261120   ;;  %v2304_v8 = vld [vmem:[%s3099_s18] sm:$0xff]   ;;  %v2629_v9 = vmov 0.0   ;;  %vm2630_vm2 = vmmov 0   ;;  %v2305_v10 = vld [vmem:[%s3099_s18 + $0x8] sm:$0xff]  }
  0xe8   : > { %2082 = vmatprep.subr.bf16.mxu0 %v2629_v9  ;;  %2086 = vmatprep.mubr.msk.bf16.mxu0 %vm2630_vm2, %v2629_v9  ;;  %s3469_s25 = scalar_lea.vmem [#allocation8], %s3066_s4  ;;  %s3470_s11 = scalar_lea.vmem [#allocation9], %s3066_s4  ;;  %vm952_vm5 = vcmask 64512   ;;  %vm1024_vm6 = vcmask 1043456   ;;  %vm1417_vm7 = vcmask 130048   ;;  %vm1419_vm8 = vcmask 195584  }
  0xe9   : > { %2083 = vmatpush3.bf16.msra.mxu0 %v2304_v8  ;;  %2090 = vmatprep.subr.bf16.mxu1 %v2629_v9  ;;  %v2010_v19 = vld [vmem:[%s3469_s25] ss:$0 sm:$0xff]  ;;  %s3471_s21 = sld [smem:[#allocation34_spill]]  ;;  %s2631_s13 = smov 120   ;;  %vm1633_vm11 = vcmask 523264  }
  0xea   : > { %2084 = vmatprep.subr.bf16.mxu0 %v2629_v9  ;;  %2092 = vmatprep.mubr.msk.bf16.mxu1 %vm2630_vm2, %v2629_v9  ;;  %v2011_v22 = vld [vmem:[%s3470_s11] ss:$0 sm:$0xff]  ;;  %s2632_s28 = smov 96   ;;  %s2633_s12 = smov 88  }
  0xeb   : > { %s2634_s26 = smov 80   ;;  %s2635_s2 = smov 112  }
  0xec   : > { %s2636_s6 = smov 72   ;;  %s2637_s10 = smov 104  }
  0xed   : > { %s2009_s15 = sshll.u32 %s3468_s9, 3  ;;  %2085 = vmatpush3.bf16.msra.mxu0 %v2305_v10  ;;  %s2639_s11 = smov 56  }
  0xee   : > { %s3138_s22 = scalar_lea.vmem [#allocation2], %s2009_s15  ;;  %2096 = vmatprep.subr.bf16.mxu0 %v2629_v9  ;;  %s3473_s15 = sld [smem:[#allocation32_spill]] }
  0xef   : > { %v3141_v1 = vld [vmem:[%s3138_s22] sm:$0xff]  ;;  %s3472_s20 = scalar_lea.vmem %s3471_s21, %s3085_s27  ;;  %s2640_s3 = smov 48  }
  0xf0   : > { %v846_v2 = vsel %vm845_vm1, %v3141_v1, 0.0  ;;  %v2012_v26 = vld [vmem:[%s3472_s20] ss:$0 sm:$0xff]  ;;  %s2641_s18 = smov 40   ;;  %s2642_s21 = smov 8  }
  0xf1   : > { %847 = vadd.xlane.f32.xlu0 %v846_v2  ;;  %s2643_s20 = smov 16  }
  0xf4   : > { %s3474_s25 = scalar_lea.vmem %s3473_s15, %s3505_s1  ;;  %s2638_s1 = smov 64  }
  0xf5   : > { %v2017_v45 = vld [vmem:[%s3474_s25] ss:$0 sm:$0xff] }
 0x17e   : > { %v848_v3 = vpop.xlane.xlu0 %847 }
 0x17f   : > { %v850_v4 = vmul.f32 0.03125, %v848_v3 }
 0x181   : > { %v851_v5 = vsub.f32 %v3141_v1, %v850_v4 }
 0x183   : > { %v852_v6 = vmul.f32 %v851_v5, %v851_v5  ;;  %v870_v20 = vmul.f32 %v2010_v19, %v851_v5 }
 0x185   : > { %v853_v7 = vsel %vm845_vm1, %v852_v6, 0.0 }
 0x186   : > { %854 = vadd.xlane.f32.xlu0 %v853_v7 }
 0x213   : > { %v855_v11 = vpop.xlane.xlu0 %854 }
 0x214   : > { %v856_v12 = vmul.f32 0.032258064, %v855_v11 }
 0x216   : > { %2314 = vrsqrt.f32 %v856_v12  ;;  %vm859_vm3 = vcmp.eq.f32.partialorder %v856_v12, inf  ;;  %v862_v15 = vand.u32 2147483648, %v856_v12  ;;  %vm861_vm4 = vcmp.eq.f32.partialorder %v856_v12, 0.0 }
 0x220   : > { %v2315_v13 = vpop.eup %2314 }
 0x221   : > { %v858_v14 = vmul.f32 %v2315_v13, %v856_v12 }
 0x223   : > { %v860_v16 = vsel %vm859_vm3, %v856_v12, %v858_v14 }
 0x224   : > { %v863_v17 = vsel %vm861_vm4, %v862_v15, %v860_v16 }
 0x225   : > { %v871_v18 = vadd.f32 1e-06, %v863_v17 }
 0x227   : > { %2316 = vrcp.f32 %v871_v18 }
 0x231   : > { %v2317_v21 = vpop.eup %2316 }
 0x232   : > { %v873_v23 = vmul.f32 %v2317_v21, %v870_v20 }
 0x234   : > { %v880_v24 = vadd.f32 %v2011_v22, %v873_v23 }
 0x236   : > { %v881_v25 = vpack.c.bf16 %v880_v24, %v880_v24 }
 0x238   : > { %2087 = vmatmul.mubr.msk.bf16.vlgmr.msra.gmra.mrb[0].mxu0 %vm845_vm1, %v881_v25 }
 0x239   : > { %2098 = vmatprep.mubr.msk.bf16.mxu0 %vm2630_vm2, %v2629_v9 }
 0x30b   : > { %v942_v27 = vpop.f32.mrb[0].mxu0 }
 0x30c   : > { %v943_v28 = vadd.f32 %v2012_v26, %v942_v27  ;;  %v2088_v29 = vpop.f32.mrb[1].mxu0 }
 0x30d   : > { %v945_v30 = vpop.f32.mrb[2].mxu0 }
 0x30e   : > { %v3169_v31 = vpack.c.bf16 %v943_v28, %v943_v28  ;;  %v2089_v32 = vpop.f32.mrb[3].mxu0 }
 0x310   : > { %1068 = vrot.lane.b32.xlu0 %v3169_v31, %s2631_s13  ;;  %950 = vrot.lane.b32.xlu1 %v3169_v31, %s2632_s28  ;;  %s2644_s13 = smov 24  }
 0x314   : > { %1070 = vrot.lane.b32.xlu1 %v3169_v31, %s2633_s12 }
 0x318   : > { %1182 = vrot.lane.b32.xlu1 %v3169_v31, %s2634_s26 }
 0x31c   : > { %1180 = vrot.lane.b32.xlu1 %v3169_v31, %s2635_s2 }
 0x320   : > { %1294 = vrot.lane.b32.xlu1 %v3169_v31, %s2636_s6 }
 0x324   : > { %1292 = vrot.lane.b32.xlu1 %v3169_v31, %s2637_s10 }
 0x382   : > { %v951_v33 = vpop.permute.xlu1 %950  ;;  %v1069_v38 = vpop.permute.xlu0 %1068 }
 0x383   : > { %v957_v34 = vsel %vm952_vm5, %v951_v33, 0 }
 0x384   : > { %2091 = vmatpush3.bf16.xpose.msra.mxu1 %v957_v34 }
 0x385   : > { %2102 = vmatprep.subr.bf16.mxu1 %v2629_v9 }
 0x386   : > { %v1071_v35 = vpop.permute.xlu1 %1070 }
 0x387   : > { %v1076_v36 = vsel %vm952_vm5, %v1071_v35, 0 }
 0x38a   : > { %v1183_v37 = vpop.permute.xlu1 %1182 }
 0x38b   : > { %2093 = vmatmul.mubr.msk.bf16.vlgmr.msra.gmra.mrb[0].mxu1 %vm952_vm5, %v3169_v31  ;;  %v1188_v40 = vsel %vm952_vm5, %v1183_v37, 0 }
 0x38c   : > { %2103 = vmatpush3.bf16.xpose.msra.mxu1 %v1076_v36  ;;  %2104 = vmatprep.mubr.msk.bf16.mxu1 %vm2630_vm2, %v2629_v9 }
 0x38d   : > { %2114 = vmatprep.subr.bf16.mxu1 %v2629_v9 }
 0x38e   : > { %v1181_v39 = vpop.permute.xlu1 %1180 }
 0x392   : > { %v1295_v41 = vpop.permute.xlu1 %1294 }
 0x393   : > { %2105 = vmatmul.mubr.msk.bf16.vlgmr.msra.gmra.mrb[4].mxu1 %vm952_vm5, %v1069_v38  ;;  %v1300_v42 = vsel %vm952_vm5, %v1295_v41, 0 }
 0x394   : > { %2115 = vmatpush3.bf16.xpose.msra.mxu1 %v1188_v40  ;;  %2116 = vmatprep.mubr.msk.bf16.mxu1 %vm2630_vm2, %v2629_v9 }
 0x395   : > { %2126 = vmatprep.subr.bf16.mxu1 %v2629_v9 }
 0x396   : > { %v1293_v43 = vpop.permute.xlu1 %1292 }
 0x39b   : > { %2117 = vmatmul.mubr.msk.bf16.vlgmr.msra.gmra.mrb[8].mxu1 %vm952_vm5, %v1181_v39 }
 0x39c   : > { %2127 = vmatpush3.bf16.xpose.msra.mxu1 %v1300_v42  ;;  %2128 = vmatprep.mubr.msk.bf16.mxu1 %vm2630_vm2, %v2629_v9 }
 0x39d   : > { %2138 = vmatprep.subr.bf16.mxu1 %v2629_v9 }
 0x3a3   : > { %2129 = vmatmul.mubr.msk.bf16.vlgmr.msra.gmra.mrb[12].mxu1 %vm952_vm5, %v1293_v43 }
 0x3a4   : > { %2142 = vmatprep.mubr.msk.bf16.mxu1 %vm2630_vm2, %v2629_v9 }
 0x45e   : > { %v993_v44 = vpop.f32.mrb[0].mxu1 }
 0x45f   : > { %v999_v46 = vmul.f32 0.35355338, %v993_v44  ;;  %v2094_v47 = vpop.f32.mrb[1].mxu1 }
 0x460   : > { %v996_v48 = vpop.f32.mrb[2].mxu1 }
 0x461   : > { %v2095_v49 = vpop.f32.mrb[3].mxu1  ;;  %v1006_v50 = vadd.f32 %v2017_v45, %v999_v46 }
 0x463   : > { %v1007_v51 = vsel %vm952_vm5, %v1006_v50, -inf }
 0x464   : > { %1008 = vmax.xlane.f32.xlu1 %v1007_v51 }
 0x466   : > { %v1112_v52 = vpop.f32.mrb[4].mxu1 }
 0x467   : > { %v1118_v53 = vmul.f32 0.35355338, %v1112_v52  ;;  %v2106_v54 = vpop.f32.mrb[5].mxu1 }
 0x468   : > { %v1115_v55 = vpop.f32.mrb[6].mxu1 }
 0x469   : > { %v2107_v56 = vpop.f32.mrb[7].mxu1  ;;  %v1119_v57 = vadd.f32 %v2017_v45, %v1118_v53 }
 0x46b   : > { %v1120_v58 = vsel %vm952_vm5, %v1119_v57, -inf }
 0x46c   : > { %1121 = vmax.xlane.f32.xlu0 %v1120_v58 }
 0x46e   : > { %v1224_v59 = vpop.f32.mrb[8].mxu1 }
 0x46f   : > { %v1230_v60 = vmul.f32 0.35355338, %v1224_v59  ;;  %v2118_v61 = vpop.f32.mrb[9].mxu1 }
 0x470   : > { %v1227_v62 = vpop.f32.mrb[10].mxu1 }
 0x471   : > { %v2119_v63 = vpop.f32.mrb[11].mxu1  ;;  %v1231_v0 = vadd.f32 %v2017_v45, %v1230_v60 }
 0x472   : > { %v2306_v63 = vld [vmem:[%s3104_s8] sm:$0xff]  }
 0x473   : > { %v1232_v2 = vsel %vm952_vm5, %v1231_v0, -inf  ;;  %2139 = vmatpush3.bf16.msra.mxu1 %v2306_v63 }
 0x474   : > { %1233 = vmax.xlane.f32.xlu1 %v1232_v2  ;;  %2140 = vmatprep.subr.bf16.mxu1 %v2629_v9 }
 0x476   : > { %v1336_v3 = vpop.f32.mrb[12].mxu1 }
 0x477   : > { %v1342_v4 = vmul.f32 0.35355338, %v1336_v3  ;;  %v2130_v5 = vpop.f32.mrb[13].mxu1 }
 0x478   : > { %v1339_v6 = vpop.f32.mrb[14].mxu1 }
 0x479   : > { %v2131_v7 = vpop.f32.mrb[15].mxu1  ;;  %v1343_v8 = vadd.f32 %v2017_v45, %v1342_v4 }
 0x47b   : > { %v1344_v10 = vsel %vm952_vm5, %v1343_v8, -inf }
 0x47c   : > { %1345 = vmax.xlane.f32.xlu0 %v1344_v10 }
 0x4f1   : > { %v1009_v11 = vpop.xlane.xlu1 %1008 }
 0x4f2   : > { %v1010_v12 = vsub.f32 %v1006_v50, %v1009_v11 }
 0x4f4   : > { %v1011_v13 = vmul.f32 1.442695, %v1010_v12 }
 0x4f6   : > { %2318 = vpow2.f32 %v1011_v13 }
 0x4f9   : > { %v1122_v14 = vpop.xlane.xlu0 %1121 }
 0x4fa   : > { %v1123_v15 = vsub.f32 %v1119_v57, %v1122_v14 }
 0x4fc   : > { %v1124_v16 = vmul.f32 1.442695, %v1123_v15 }
 0x4fe   : > { %2320 = vpow2.f32 %v1124_v16 }
 0x500   : > { %v2319_v17 = vpop.eup %2318 }
 0x501   : > { %v1013_v18 = vsel %vm952_vm5, %v2319_v17, 0.0  ;;  %v1234_v26 = vpop.xlane.xlu1 %1233 }
 0x502   : > { %1014 = vadd.xlane.f32.xlu1 %v1013_v18  ;;  %v1235_v27 = vsub.f32 %v1231_v0, %v1234_v26  ;;  %v2307_v0 = vld [vmem:[%s3104_s8 + $0x8] sm:$0xff]   ;;  %s3475_s8 = scalar_lea.vmem [#allocation6], %s3066_s4  ;;  %s3479_s4 = sld [smem:[#allocation22_spill]] }
 0x503   : > { %2141 = vmatpush3.bf16.msra.mxu1 %v2307_v0  ;;  %v2025_v18 = vld [vmem:[%s3475_s8] ss:$0 sm:$0xff] }
 0x504   : > { %v1236_v28 = vmul.f32 1.442695, %v1235_v27  ;;  %2154 = vmatprep.subr.bf16.mxu1 %v2629_v9 }
 0x508   : > { %v2321_v19 = vpop.eup %2320  ;;  %p2041_p13 = scmp.ne.s32.totalorder %s3479_s4, 1 }
 0x509   : > { %v1346_v20 = vpop.xlane.xlu0 %1345  ;;  %v1126_v21 = vsel %vm952_vm5, %v2321_v19, 0.0  ;;  %s3481_s29 = sld [smem:[#allocation46_spill]] (!%p2041_p13) }
 0x50a   : > { %v1347_v22 = vsub.f32 %v1343_v8, %v1346_v20  ;;  %1127 = vadd.xlane.f32.xlu0 %v1126_v21 }
 0x50c   : > { %v1348_v23 = vmul.f32 1.442695, %v1347_v22 }
 0x50e   : > { %2322 = vpow2.f32 %v1348_v23 }
 0x50f   : > { %2324 = vpow2.f32 %v1236_v28 }
 0x513   : > { %1019 = vrot.lane.b32.xlu1 %v3169_v31, %s2638_s1 }
 0x518   : > { %v2323_v24 = vpop.eup %2322 }
 0x519   : > { %v1350_v25 = vsel %vm952_vm5, %v2323_v24, 0.0  ;;  %v2325_v29 = vpop.eup %2324 }
 0x51a   : > { %1351 = vadd.xlane.f32.xlu0 %v1350_v25  ;;  %v1238_v30 = vsel %vm952_vm5, %v2325_v29, 0.0 }
 0x530   : > { %1132 = vrot.lane.b32.xlu0 %v3169_v31, %s2639_s11 }
 0x537   : > { %1239 = vadd.xlane.f32.xlu1 %v1238_v30 }
 0x548   : > { %1244 = vrot.lane.b32.xlu1 %v3169_v31, %s2640_s3 }
 0x54c   : > { %1356 = vrot.lane.b32.xlu1 %v3169_v31, %s2641_s18 }
 0x58f   : > { %v1015_v32 = vpop.xlane.xlu1 %1014 }
 0x590   : > { %2326 = vrcp.f32 %v1015_v32  ;;  %v2308_v32 = vld [vmem:[%s3109_s23] sm:$0xff]  }
 0x593   : > { %v1020_v33 = vpop.permute.xlu1 %1019 }
 0x594   : > { %v1026_v34 = vsel %vm1024_vm6, %v1020_v33, 0  ;;  %v2309_v33 = vld [vmem:[%s3109_s23 + $0x8] sm:$0xff]  }
 0x595   : > { %2097 = vmatpush3.bf16.msra.mxu0 %v1026_v34  ;;  %v2310_v34 = vld [vmem:[%s3115_s30] sm:$0xff]  }
 0x596   : > { %2108 = vmatprep.subr.bf16.mxu0 %v2629_v9 }
 0x597   : > { %v1128_v36 = vpop.xlane.xlu0 %1127 }
 0x598   : > { %2328 = vrcp.f32 %v1128_v36 }
 0x59a   : > { %v2327_v35 = vpop.eup %2326 }
 0x59b   : > { %v1017_v37 = vmul.f32 %v2327_v35, %v2319_v17 }
 0x59d   : > { %v1018_v38 = vpack.c.bf16 %v1017_v37, %v1017_v37 }
 0x59f   : > { %2099 = vmatmul.mubr.msk.bf16.vlgmr.msra.gmra.mrb[4].mxu0 %vm952_vm5, %v1018_v38 }
 0x5a0   : > { %2110 = vmatprep.mubr.msk.bf16.mxu0 %vm2630_vm2, %v2629_v9 }
 0x5a2   : > { %v2329_v31 = vpop.eup %2328 }
 0x5a3   : > { %v1130_v40 = vmul.f32 %v2329_v31, %v2321_v19 }
 0x5a5   : > { %v1131_v43 = vpack.c.bf16 %v1130_v40, %v1130_v40 }
 0x5a7   : > { %v1352_v39 = vpop.xlane.xlu0 %1351 }
 0x5ab   : > { %v1133_v41 = vpop.permute.xlu0 %1132 }
 0x5ac   : > { %v1138_v42 = vsel %vm1024_vm6, %v1133_v41, 0 }
 0x5ad   : > { %2109 = vmatpush3.bf16.msra.mxu0 %v1138_v42  ;;  %v2029_v42 = vld [vmem:[%s825_s19] ss:$0 sm:$0xff] }
 0x5ae   : > { %2120 = vmatprep.subr.bf16.mxu0 %v2629_v9 }
 0x5b0   : > { %2111 = vmatmul.mubr.msk.bf16.vlgmr.msra.gmra.mrb[8].mxu0 %vm952_vm5, %v1131_v43 }
 0x5b1   : > { %2122 = vmatprep.mubr.msk.bf16.mxu0 %vm2630_vm2, %v2629_v9 }
 0x5c4   : > { %v1240_v44 = vpop.xlane.xlu1 %1239 }
 0x5c5   : > { %2330 = vrcp.f32 %v1240_v44 }
 0x5c6   : > { %2332 = vrcp.f32 %v1352_v39 }
 0x5c8   : > { %v1245_v45 = vpop.permute.xlu1 %1244 }
 0x5c9   : > { %v1250_v46 = vsel %vm1024_vm6, %v1245_v45, 0  ;;  %v2030_v45 = vld [vmem:[%s828_s14] ss:$0 sm:$0xff] }
 0x5ca   : > { %2121 = vmatpush3.bf16.msra.mxu0 %v1250_v46 }
 0x5cb   : > { %2132 = vmatprep.subr.bf16.mxu0 %v2629_v9 }
 0x5cc   : > { %v1357_v49 = vpop.permute.xlu1 %1356 }
 0x5cd   : > { %v1362_v52 = vsel %vm1024_vm6, %v1357_v49, 0  ;;  %v2312_v49 = vld [vmem:[%s3115_s30 + $0x10] sm:$0xff]  }
 0x5cf   : > { %v2331_v47 = vpop.eup %2330 }
 0x5d0   : > { %v1242_v48 = vmul.f32 %v2331_v47, %v2325_v29  ;;  %v2333_v51 = vpop.eup %2332 }
 0x5d1   : > { %v1354_v53 = vmul.f32 %v2333_v51, %v2323_v24  ;;  %v2031_v51 = vld [vmem:[%s694_s5] ss:$0 sm:$0xff] }
 0x5d2   : > { %v1243_v50 = vpack.c.bf16 %v1242_v48, %v1242_v48 }
 0x5d3   : > { %v1355_v54 = vpack.c.bf16 %v1354_v53, %v1354_v53 }
 0x5d4   : > { %2123 = vmatmul.mubr.msk.bf16.vlgmr.msra.gmra.mrb[12].mxu0 %vm952_vm5, %v1243_v50  ;;  %v2313_v50 = vld [vmem:[%s3115_s30 + $0x18] sm:$0xff]  }
 0x5d5   : > { %2133 = vmatpush3.bf16.msra.mxu0 %v1362_v52  ;;  %2134 = vmatprep.mubr.msk.bf16.mxu0 %vm2630_vm2, %v2629_v9 }
 0x5d6   : > { %2146 = vmatprep.subr.bf16.mxu0 %v2629_v9 }
 0x5dc   : > { %2135 = vmatmul.mubr.msk.bf16.vlgmr.msra.gmra.mrb[16].mxu0 %vm952_vm5, %v1355_v54 }
 0x5dd   : > { %2150 = vmatprep.mubr.msk.bf16.mxu0 %vm2630_vm2, %v2629_v9  ;;  %2147 = vmatpush3.bf16.msra.mxu0 %v2308_v32 }
 0x5de   : > { %2148 = vmatprep.subr.bf16.mxu0 %v2629_v9 }
 0x5e1   : > { %2149 = vmatpush3.bf16.msra.mxu0 %v2309_v33 }
 0x672   : > { %v1062_v55 = vpop.f32.mrb[4].mxu0 }
 0x673   : > { %v2100_v56 = vpop.f32.mrb[5].mxu0 }
 0x674   : > { %v1065_v57 = vpop.f32.mrb[6].mxu0 }
 0x675   : > { %v2101_v58 = vpop.f32.mrb[7].mxu0 }
 0x683   : > { %v1174_v59 = vpop.f32.mrb[8].mxu0 }
 0x684   : > { %1405 = vrot.lane.b32.xlu0 %v1174_v59, %s2642_s21  ;;  %v2112_v60 = vpop.f32.mrb[9].mxu0  ;;  %v2035_v59 = vld [vmem:[%s822_s16] ss:$0 sm:$0xff]  ;;  %s3480_s16 = sld [smem:[#allocation45_spill]] (!%p2041_p13) }
 0x685   : > { %v1177_v61 = vpop.f32.mrb[10].mxu0 }
 0x686   : > { %v2113_v62 = vpop.f32.mrb[11].mxu0 }
 0x6a7   : > { %v1286_v2 = vpop.f32.mrb[12].mxu0 }
 0x6a8   : > { %1409 = vrot.lane.b32.xlu1 %v1286_v2, %s2643_s20  ;;  %v2124_v3 = vpop.f32.mrb[13].mxu0 }
 0x6a9   : > { %v1289_v4 = vpop.f32.mrb[14].mxu0 }
 0x6aa   : > { %v2125_v5 = vpop.f32.mrb[15].mxu0 }
 0x6af   : > { %v1398_v6 = vpop.f32.mrb[16].mxu0 }
 0x6b0   : > { %1413 = vrot.lane.b32.xlu0 %v1398_v6, %s2644_s13  ;;  %v2136_v7 = vpop.f32.mrb[17].mxu0 }
 0x6b1   : > { %v1401_v8 = vpop.f32.mrb[18].mxu0 }
 0x6b2   : > { %v2137_v10 = vpop.f32.mrb[19].mxu0 }
 0x6f6   : > { %v1406_v11 = vpop.permute.xlu0 %1405 }
 0x6f7   : > { %v1416_v13 = vsel %vm952_vm5, %v1062_v55, %v1406_v11 }
 0x71a   : > { %v1410_v12 = vpop.permute.xlu1 %1409 }
 0x71b   : > { %v1418_v14 = vsel %vm1417_vm7, %v1416_v13, %v1410_v12 }
 0x722   : > { %v1414_v15 = vpop.permute.xlu0 %1413 }
 0x723   : > { %v1420_v16 = vsel %vm1419_vm8, %v1418_v14, %v1414_v15 }
 0x724   : > { %v1421_v17 = vpack.c.bf16 %v1420_v16, %v1420_v16 }
 0x726   : > { %2143 = vmatmul.mubr.msk.bf16.vlgmr.msra.gmra.mrb[16].mxu1 %vm845_vm1, %v1421_v17  ;;  %v2042_v17 = vld [vmem:[%s3480_s16] ss:$0 sm:$0xff] (!%p2041_p13) }
 0x727   : > { %2162 = vmatprep.mubr.msk.bf16.mxu1 %vm2630_vm2, %v2629_v9  ;;  %2155 = vmatpush3.bf16.msra.mxu1 %v2310_v34 }
 0x728   : > { %2156 = vmatprep.subr.bf16.mxu1 %v2629_v9 }
 0x7f9   : > { %v1482_v19 = vpop.f32.mrb[16].mxu1 }
 0x7fa   : > { %v1483_v20 = vadd.f32 %v2025_v18, %v1482_v19  ;;  %v2144_v21 = vpop.f32.mrb[17].mxu1 }
 0x7fb   : > { %v1485_v22 = vpop.f32.mrb[18].mxu1 }
 0x7fc   : > { %v1488_v23 = vadd.f32 %v1483_v20, %v3141_v1  ;;  %v2145_v24 = vpop.f32.mrb[19].mxu1  ;;  %v2311_v1 = vld [vmem:[%s3115_s30 + $0x8] sm:$0xff]   ;;  %v2043_v20 = vld [vmem:[%s3481_s29] ss:$0 sm:$0xff] (!%p2041_p13) }
 0x7fd   : > { %2157 = vmatpush3.bf16.msra.mxu1 %v2311_v1 }
 0x7fe   : > { %v1491_v25 = vsel %vm845_vm1, %v1488_v23, 0.0  ;;  %2158 = vmatprep.subr.bf16.mxu1 %v2629_v9 }
 0x7ff   : > { %1492 = vadd.xlane.f32.xlu1 %v1491_v25 }
 0x801   : > { %2159 = vmatpush3.bf16.msra.mxu1 %v2312_v49 }
 0x802   : > { %2160 = vmatprep.subr.bf16.mxu1 %v2629_v9 }
 0x805   : > { %2161 = vmatpush3.bf16.msra.mxu1 %v2313_v50 }
 0x88c   : > { %v1493_v26 = vpop.xlane.xlu1 %1492 }
 0x88d   : > { %v1494_v27 = vmul.f32 0.03125, %v1493_v26 }
 0x88f   : > { %v1495_v28 = vsub.f32 %v1488_v23, %v1494_v27 }
 0x891   : > { %v1496_v29 = vmul.f32 %v1495_v28, %v1495_v28  ;;  %v1514_v43 = vmul.f32 %v2029_v42, %v1495_v28 }
 0x893   : > { %v1497_v30 = vsel %vm845_vm1, %v1496_v29, 0.0 }
 0x894   : > { %1498 = vadd.xlane.f32.xlu0 %v1497_v30 }
 0x921   : > { %v1499_v35 = vpop.xlane.xlu0 %1498 }
 0x922   : > { %v1500_v36 = vmul.f32 0.032258064, %v1499_v35 }
 0x924   : > { %2334 = vrsqrt.f32 %v1500_v36  ;;  %vm1503_vm9 = vcmp.eq.f32.partialorder %v1500_v36, inf  ;;  %v1506_v31 = vand.u32 2147483648, %v1500_v36  ;;  %vm1505_vm10 = vcmp.eq.f32.partialorder %v1500_v36, 0.0 }
 0x92e   : > { %v2335_v37 = vpop.eup %2334 }
 0x92f   : > { %v1502_v38 = vmul.f32 %v2335_v37, %v1500_v36 }
 0x931   : > { %v1504_v39 = vsel %vm1503_vm9, %v1500_v36, %v1502_v38 }
 0x932   : > { %v1507_v40 = vsel %vm1505_vm10, %v1506_v31, %v1504_v39 }
 0x933   : > { %v1515_v41 = vadd.f32 1e-06, %v1507_v40 }
 0x935   : > { %2336 = vrcp.f32 %v1515_v41 }
 0x93f   : > { %v2337_v44 = vpop.eup %2336 }
 0x940   : > { %v1517_v46 = vmul.f32 %v2337_v44, %v1514_v43 }
 0x942   : > { %v1524_v47 = vadd.f32 %v2030_v45, %v1517_v46 }
 0x944   : > { %v1525_v48 = vpack.c.bf16 %v1524_v47, %v1524_v47 }
 0x946   : > { %2151 = vmatmul.mubr.msk.bf16.vlgmr.msra.gmra.mrb[20].mxu0 %vm845_vm1, %v1525_v48 }
 0xa19   : > { %v1586_v52 = vpop.f32.mrb[20].mxu0 }
 0xa1a   : > { %v1587_v53 = vadd.f32 %v2031_v51, %v1586_v52  ;;  %v2152_v54 = vpop.f32.mrb[21].mxu0 }
 0xa1b   : > { %v1589_v55 = vpop.f32.mrb[22].mxu0 }
 0xa1c   : > { %v1592_v56 = vmax.f32 %v1587_v53, 0.0  ;;  %v2153_v57 = vpop.f32.mrb[23].mxu0 }
 0xa1e   : > { %v1593_v58 = vpack.c.bf16 %v1592_v56, %v1592_v56 }
 0xa20   : > { %2163 = vmatmul.mubr.msk.bf16.vlgmr.msra.gmra.mrb[20].mxu1 %vm1633_vm11, %v1593_v58 }
 0xaf2   : > { %1682 = sbr.rel (%p2041_p13) target bundleno = 3135 (0xc3f), region = 112 }
 0xaf3   : > { %v1671_v9 = vpop.f32.mrb[20].mxu1 }
 0xaf4   : > { %v1672_v60 = vadd.f32 %v2035_v59, %v1671_v9  ;;  %v2164_v61 = vpop.f32.mrb[21].mxu1 }
 0xaf5   : > { %v1674_v62 = vpop.f32.mrb[22].mxu1 }
 0xaf6   : > { %v1677_v63 = vadd.f32 %v1672_v60, %v1488_v23  ;;  %v2165_v0 = vpop.f32.mrb[23].mxu1 }
 0xaf8   : > { %1678 = vst.msk [vmem:[%s3138_s22] sm:$0xff] %vm845_vm1, %v1677_v63  ;;  %v1685_v2 = vsel (!%p2041_p13), %vm845_vm1, %v1677_v63, 0.0 }
 0xaf9   : > { %1686 = vadd.xlane.f32.xlu0 %v1685_v2 }
 0xb86   : > { %v1687_v3 = vpop.xlane.xlu0 %1686 }
 0xb87   : > { %v1688_v4 = vmul.f32 0.03125, %v1687_v3 }
 0xb89   : > { %v1689_v5 = vsub.f32 %v1677_v63, %v1688_v4 }
 0xb8b   : > { %v1690_v6 = vmul.f32 %v1689_v5, %v1689_v5  ;;  %v1708_v18 = vmul.f32 %v2042_v17, %v1689_v5 }
 0xb8d   : > { %v1691_v7 = vsel %vm845_vm1, %v1690_v6, 0.0 }
 0xb8e   : > { %1692 = vadd.xlane.f32.xlu0 %v1691_v7 }
 0xc1b   : > { %v1693_v8 = vpop.xlane.xlu0 %1692 }
 0xc1c   : > { %v1694_v10 = vmul.f32 0.032258064, %v1693_v8 }
 0xc1e   : > { %2338 = vrsqrt.f32 %v1694_v10  ;;  %vm1697_vm12 = vcmp.eq.f32.partialorder %v1694_v10, inf  ;;  %v1700_v13 = vand.u32 2147483648, %v1694_v10  ;;  %vm1699_vm13 = vcmp.eq.f32.partialorder %v1694_v10, 0.0 }
 0xc28   : > { %v2339_v11 = vpop.eup %2338 }
 0xc29   : > { %v1696_v12 = vmul.f32 %v2339_v11, %v1694_v10 }
 0xc2b   : > { %v1698_v14 = vsel %vm1697_vm12, %v1694_v10, %v1696_v12 }
 0xc2c   : > { %v1701_v15 = vsel %vm1699_vm13, %v1700_v13, %v1698_v14 }
 0xc2d   : > { %v1709_v16 = vadd.f32 1e-06, %v1701_v15 }
 0xc2f   : > { %2340 = vrcp.f32 %v1709_v16 }
 0xc39   : > { %v2341_v19 = vpop.eup %2340 }
 0xc3a   : > { %v1711_v21 = vmul.f32 %v2341_v19, %v1708_v18 }
 0xc3c   : > { %v1718_v22 = vadd.f32 %v2043_v20, %v1711_v21 }
 0xc3e   : > { %1719 = vst.msk [vmem:[%s3132_s7] sm:$0xff] %vm845_vm1, %v1718_v22 }
 0xc3f PF: > { %s3482_s9 = sld [smem:[#allocation21_spill]]  ;;  %s3483_s15 = sld [smem:[#allocation28_spill]] }
 0xc40   : > { %s3484_s3 = sld [smem:[#allocation47_spill]]  ;;  %s1734_s21 = sshll.u32 %s3132_s7, 4  ;;  %s1735_s21 = int_to_ptr.vmem [resolvable:$true] %s1734_s21 }
 0xc41   : > { %s1721_s20 = scalar_lea.sflag [#allocation5], %s3052_s17  ;;  %s2492_s13 = scalar_lea.vmem %s1735_s21, 128 }
 0xc42   : > { %p2493_p3 = scmp.ne.s32.totalorder %s1735_s21, %s2492_s13  ;;  %s2645_s8 = smov [#allocation12]  }
 0xc43   : > { %s2496_s23 = sshll.u32 %s2645_s8, 4  ;;  %s2497_s23 = int_to_ptr.vmem [resolvable:$false] %s2496_s23 }
 0xc44   : > { %s2498_s28 = scalar_lea.vmem %s2497_s23, 256  ;;  %p2499_p1 = scmp.lt.s32.totalorder %s1735_s21, %s2497_s23 }
 0xc45   : > { %s2045_s25 = sshll.u32 %s3482_s9, 7  ;;  %p3485_p7 = scmp.ne.s32.totalorder %s3483_s15, 0 }
 0xc46   : > { %s3294_s18 = scalar_lea.hbm %s3484_s3, %s2045_s25  ;;  %p2500_p0 = scmp.lt.s32.totalorder %s2498_s28, %s2492_s13 }
 0xc47   : > { %p2494_p2 = pnand %p2493_p3, %p3485_p7 }
 0xc48   : > { %p2501_p11 = por %p2500_p0, %p2499_p1 }
 0xc49   : > { %p2495_p4 = pneg %p2494_p2 }
 0xc4b   : > { %p2502_p5 = pnand %p2501_p11, %p2495_p4 }
 0xc4d   : > { %2505 = shalt.err (!%p2502_p5)
}
 0xc4e   : > { %s2506_s17 = scalar_lea.hbm %s3294_s18, 128  ;;  %s2510_s26 = scalar_lea.hbm %s3484_s3, 256 }
 0xc4f   : > { %p2507_p9 = scmp.ne.s32.totalorder %s3294_s18, %s2506_s17  ;;  %p2511_p10 = scmp.lt.u32.totalorder %s3294_s18, %s3484_s3 }
 0xc50   : > { %p2512_p8 = scmp.lt.u32.totalorder %s2510_s26, %s2506_s17  ;;  %p2514_p3 = scmp.lt.u32.totalorder %s2506_s17, %s3294_s18 }
 0xc51   : > { %p2508_p6 = pnand %p2507_p9, %p3485_p7 }
 0xc52   : > { %p2513_p13 = por %p2512_p8, %p2511_p10 }
 0xc53   : > { %p2509_p12 = pneg %p2508_p6 }
 0xc54   : > { %p2515_p2 = por %p2514_p3, %p2513_p13 }
 0xc56   : > { %p2516_p4 = pnand %p2515_p2, %p2509_p12 }
 0xc58   : > { %2519 = shalt.err (!%p2516_p4)
}
 0xc59   : > { %2176 = dma.vmem_to_hbm [thread:$0]  (%p3485_p7), %s1735_s21, 128, %s3294_s18, %s1721_s20  }
 0xc5a PF: > { %s3486_s19 = sld [smem:[#allocation30_spill]]  ;;  %p2199_p1 = scmp.ge.s32.totalorder %s2622_s0, 2 }
 0xc5b   : > { %s1746_s14 = sand.u32 1, %s2594_s24  }
 0xc5c   : > { %s1747_s10 = scalar_lea.sflag [#allocation5], %s1746_s14 }
 0xc60   : > { %p3487_p0 = scmp.ne.s32.totalorder %s3486_s19, 0 }
 0xc62   : > { %p2195_p11 = pnand %p2199_p1, %p3487_p0 }
 0xc64   : > { %2577 = dma.done.wait (!%p2195_p11), %s1747_s10, 128  }
 0xc65   : > { %2579 = vsyncadd (!%p2195_p11), %s1747_s10, 4294967168  ;;  %s38_s0 = sadd.s32 1, %s2622_s0   ;;  %s3488_s21 = sld [smem:[#allocation17_spill]] }
 0xc66   : > { %p35_p5 = scmp.ge.s32.totalorder %s38_s0, 6   ;;  %s3489_s22 = sld [smem:[#allocation18_spill]] }
 0xc67   : > { %s3490_s23 = sld [smem:[#allocation29_spill]]  ;;  %s3491_s24 = sld [smem:[#allocation19_spill]] }
 0xc68   : > { %s3492_s25 = sld [smem:[#allocation20_spill]]  ;;  %s3493_s26 = sld [smem:[#allocation27_spill]] }
 0xc69   : > { %s3494_s27 = sld [smem:[#allocation23_spill]]  ;;  %s3495_s28 = sld [smem:[#allocation24_spill]] }
 0xc6a   : > { %s3496_s29 = sld [smem:[#allocation25_spill]]  ;;  %s3497_s30 = sld [smem:[#allocation26_spill]] }
 0xc6b   :  { %37 = sbr.rel (!%p35_p5) target bundleno = 31 (0x1f), region = 214 }
 0xc72   :  { %1752 = vsyncpa [#allocation4], 1 }
 0xc73   :  { %1754 = vsyncpa [#allocation4 + $0x1], 1 }
 0xc74   :  { %1755 = vsyncpa [#allocation7], 1 }
 0xc75   :  { %1757 = vsyncpa [#allocation7 + $0x1], 1 }
 0xc76   :  { %1758 = vsyncpa [#allocation10], 1 }
 0xc77   :  { %1760 = vsyncpa [#allocation10 + $0x1], 1 }
 0xc78   :  { %1761 = vsyncpa [#allocation5], 1 }
 0xc79   :  { %1763 = vsyncpa [#allocation5 + $0x1], 1 }

</bundles_post_ra>
